<compile_context>
chip_gen: v7x
topology: tpu7x:2x2x1
jax: 0.10.0
libtpu: 0.0.40
codegen_flags: <defaults>
</compile_context>

<pallas_src>
import functools

import jax
import jax.numpy as jnp
from jax.experimental import pallas as pl
from jax.experimental.pallas import tpu as pltpu


# -----------------------------------------------------------------------------
# Fused kernel: batched input projection + LSTM recurrence + fc epilogue.
# -----------------------------------------------------------------------------
def _joke_rnn_kernel(x_ref, h0_ref, c0_ref, wih_ref, whh_ref, b_ref,
                     wfc_ref, bfc_ref,
                     out_ref, hn_ref, cn_ref,
                     gx_scr, hall_scr):
    B, H = h0_ref.shape
    TB = x_ref.shape[0]
    T = TB // B

    # One well-shaped matmul for every timestep's input projection (+ bias),
    # PyTorch gate order [i, f, g, o] along the 4H axis.
    gx_scr[...] = (
        jnp.dot(x_ref[...], wih_ref[...], preferred_element_type=jnp.float32)
        + b_ref[...])

    def sigmoid(x):
        # exp on EUP + approx reciprocal on EUP (keeps divide off the VALU).
        return pl.reciprocal(1.0 + jnp.exp(-x), approx=True)

    def step(t, carry):
        h, c = carry                                  # f32 (B, H) in vregs
        row = pl.multiple_of(t * B, B)
        gates = gx_scr[pl.ds(row, B), :] + jnp.dot(
            h.astype(jnp.bfloat16), whh_ref[...],
            preferred_element_type=jnp.float32)       # (B, 4H) f32

        i_g = sigmoid(gates[:, 0 * H:1 * H])
        f_g = sigmoid(gates[:, 1 * H:2 * H])
        g_g = jnp.tanh(gates[:, 2 * H:3 * H])
        o_g = sigmoid(gates[:, 3 * H:4 * H])

        c_new = f_g * c + i_g * g_g
        h_new = o_g * jnp.tanh(c_new)

        hall_scr[pl.ds(row, B), :] = h_new            # f32, sublane-aligned
        return (h_new, c_new)

    unroll = True if T <= 16 else 8
    h_n, c_n = jax.lax.fori_loop(0, T, step, (h0_ref[...], c0_ref[...]),
                                 unroll=unroll)
    hn_ref[...] = h_n
    cn_ref[...] = c_n

    # ---- Fused fc epilogue: logits = h_all @ W_fc^T + b_fc ----
    # Single cast of the whole h slab to bf16, one MXU matmul, f32 accumulate.
    logits = (
        jnp.dot(hall_scr[...].astype(jnp.bfloat16), wfc_ref[...],
                preferred_element_type=jnp.float32)
        + bfc_ref[...])                               # (T*B, V) time-major

    # Scatter time-major rows straight into the batch-first (B, T, V) output
    # (static stores, V is a multiple of 128 so the lane dim stays dense).
    for t in range(T):
        out_ref[:, t, :] = logits[t * B:(t + 1) * B, :]


# -----------------------------------------------------------------------------
# Wrapper: embedding (glue) + one fused pallas_call.
# -----------------------------------------------------------------------------
@functools.partial(jax.jit, static_argnames=())
def joke_generator_forward(tokens, params, hidden=None):
    """tokens: (B, T) int32.  Returns (logits (B,T,V), (h_n, c_n)) like PyTorch."""
    emb_table = params["embedding"]                  # (V, E) f32
    wih_bf = params["wih_T"].astype(jnp.bfloat16)    # (E, 4H)
    whh_bf = params["whh_T"].astype(jnp.bfloat16)    # (H, 4H)
    bias = params["bias"]                            # (1, 4H) f32 == b_ih + b_hh
    wfc_bf = params["wfc_T"].astype(jnp.bfloat16)    # (H, V)
    bfc = params["bfc"]                              # (1, V) f32

    B, T = tokens.shape
    E = emb_table.shape[1]
    H = whh_bf.shape[0]
    V = wfc_bf.shape[1]
    TB = T * B
    # Per-step stores into the (TB, H) f32 scratch need B % 8 == 0 to stay
    # sublane-aligned; V must be a multiple of 128 for lane-dense stores.
    # TODO(synk): pad B / V in the wrapper if a caller violates this.

    # Time-major gather directly (no activation transpose), flatten, bf16.
    x_flat = jnp.take(emb_table, tokens.T, axis=0).reshape(TB, E)
    x_flat = x_flat.astype(jnp.bfloat16)             # (T*B, E)

    if hidden is None:
        h0 = jnp.zeros((B, H), jnp.float32)
        c0 = jnp.zeros((B, H), jnp.float32)
    else:
        h0 = hidden[0][0].astype(jnp.float32)        # num_layers = 1
        c0 = hidden[1][0].astype(jnp.float32)

    logits, h_n, c_n = pl.pallas_call(
        _joke_rnn_kernel,
        out_shape=(
            jax.ShapeDtypeStruct((B, T, V), jnp.float32),   # logits, batch-first
            jax.ShapeDtypeStruct((B, H), jnp.float32),      # h_n
            jax.ShapeDtypeStruct((B, H), jnp.float32),      # c_n
        ),
        grid_spec=pltpu.PrefetchScalarGridSpec(
            num_scalar_prefetch=0,
            grid=(1,),
            in_specs=[
                pl.BlockSpec((TB, E), lambda i: (0, 0)),        # x (time-major)
                pl.BlockSpec((B, H), lambda i: (0, 0)),         # h0
                pl.BlockSpec((B, H), lambda i: (0, 0)),         # c0
                pl.BlockSpec((E, 4 * H), lambda i: (0, 0)),     # W_ih^T
                pl.BlockSpec((H, 4 * H), lambda i: (0, 0)),     # W_hh^T
                pl.BlockSpec((1, 4 * H), lambda i: (0, 0)),     # bias
                pl.BlockSpec((H, V), lambda i: (0, 0)),         # W_fc^T
                pl.BlockSpec((1, V), lambda i: (0, 0)),         # b_fc
            ],
            out_specs=[
                pl.BlockSpec((B, T, V), lambda i: (0, 0, 0)),
                pl.BlockSpec((B, H), lambda i: (0, 0)),
                pl.BlockSpec((B, H), lambda i: (0, 0)),
            ],
            scratch_shapes=[
                pltpu.VMEM((TB, 4 * H), jnp.float32),           # x@W_ih + bias
                pltpu.VMEM((TB, H), jnp.float32),               # all hidden states
            ],
        ),
        compiler_params=pltpu.CompilerParams(
            dimension_semantics=("arbitrary",),
            vmem_limit_bytes=32 * 1024 * 1024),
    )(x_flat, h0, c0, wih_bf, whh_bf, bias, wfc_bf, bfc)

    return logits, (h_n[None], c_n[None])                       # (1, B, H) each


# -----------------------------------------------------------------------------
# Pure-JAX f32 reference (PyTorch semantics) for the correctness check.
# -----------------------------------------------------------------------------
def reference_forward(tokens, params):
    emb = jnp.take(params["embedding"], tokens, axis=0)          # (B, T, E)
    B, T, E = emb.shape
    H = params["whh_T"].shape[0]

    def step(carry, x_t):
        h, c = carry
        gates = (x_t @ params["wih_T"] + h @ params["whh_T"]
                 + params["bias"][0])
        i_g = jax.nn.sigmoid(gates[:, 0 * H:1 * H])
        f_g = jax.nn.sigmoid(gates[:, 1 * H:2 * H])
        g_g = jnp.tanh(gates[:, 2 * H:3 * H])
        o_g = jax.nn.sigmoid(gates[:, 3 * H:4 * H])
        c_new = f_g * c + i_g * g_g
        h_new = o_g * jnp.tanh(c_new)
        logits_t = h_new @ params["wfc_T"] + params["bfc"][0]
        return (h_new, c_new), logits_t

    h0 = jnp.zeros((B, H), jnp.float32)
    c0 = jnp.zeros((B, H), jnp.float32)
    (h_n, c_n), logits_tm = jax.lax.scan(
        step, (h0, c0), jnp.transpose(emb, (1, 0, 2)))
    return jnp.transpose(logits_tm, (1, 0, 2)), (h_n[None], c_n[None])


# -----------------------------------------------------------------------------
# Deterministic parameter init (PyTorch-style scales), stored in f32.
# -----------------------------------------------------------------------------
def init_params(key, vocab_size, embedding_dim, hidden_dim):
    ks = jax.random.split(key, 7)
    bound = 1.0 / jnp.sqrt(hidden_dim)
    emb = jax.random.normal(ks[0], (vocab_size, embedding_dim), jnp.float32)
    w_ih = jax.random.uniform(ks[1], (4 * hidden_dim, embedding_dim),
                              jnp.float32, -bound, bound)
    w_hh = jax.random.uniform(ks[2], (4 * hidden_dim, hidden_dim),
                              jnp.float32, -bound, bound)
    b_ih = jax.random.uniform(ks[3], (4 * hidden_dim,), jnp.float32, -bound, bound)
    b_hh = jax.random.uniform(ks[4], (4 * hidden_dim,), jnp.float32, -bound, bound)
    w_fc = jax.random.uniform(ks[5], (vocab_size, hidden_dim),
                              jnp.float32, -bound, bound)
    b_fc = jax.random.uniform(ks[6], (vocab_size,), jnp.float32, -bound, bound)
    return {
        "embedding": emb,
        "wih_T": w_ih.T,                      # (E, 4H)
        "whh_T": w_hh.T,                      # (H, 4H)
        "bias": (b_ih + b_hh)[None, :],       # (1, 4H)
        "wfc_T": w_fc.T,                      # (H, V)
        "bfc": b_fc[None, :],                 # (1, V)
    }


if __name__ == "__main__":
    # Small, lane-friendly shapes (B multiple of 8, V multiple of 128).
    VOCAB, EMBED, HIDDEN = 256, 64, 128
    BATCH, SEQ = 8, 8

    key = jax.random.PRNGKey(0)
    k_param, k_tok = jax.random.split(key)
    params = init_params(k_param, VOCAB, EMBED, HIDDEN)
    tokens = jax.random.randint(k_tok, (BATCH, SEQ), 0, VOCAB, dtype=jnp.int32)

    logits, (h_n, c_n) = joke_generator_forward(tokens, params, hidden=None)
    jax.block_until_ready((logits, h_n, c_n))

    # Sanity check against the pure-f32 JAX reference (kernel uses bf16 matmul
    # inputs with f32 accumulation + approx reciprocal sigmoid, hence the
    # loosened tolerance).
    ref_logits, (ref_h, ref_c) = reference_forward(tokens, params)
    assert logits.shape == (BATCH, SEQ, VOCAB)
    assert h_n.shape == (1, BATCH, HIDDEN) and c_n.shape == (1, BATCH, HIDDEN)
    assert jnp.allclose(logits, ref_logits, atol=3e-2, rtol=3e-2)
    assert jnp.allclose(h_n, ref_h, atol=3e-2, rtol=3e-2)
    assert jnp.allclose(c_n, ref_c, atol=3e-2, rtol=3e-2)

    print("KERNEL_OK")
</pallas_src>

<mosaic_0001>
module attributes {stable_mosaic.version = 11 : i64} {
  func.func @_joke_rnn_kernel(%arg0: i32, %arg1: memref<64x64xbf16, #tpu.memory_space<vmem>>, %arg2: memref<8x128xf32, #tpu.memory_space<vmem>>, %arg3: memref<8x128xf32, #tpu.memory_space<vmem>>, %arg4: memref<64x512xbf16, #tpu.memory_space<vmem>>, %arg5: memref<128x512xbf16, #tpu.memory_space<vmem>>, %arg6: memref<1x512xf32, #tpu.memory_space<vmem>>, %arg7: memref<128x256xbf16, #tpu.memory_space<vmem>>, %arg8: memref<1x256xf32, #tpu.memory_space<vmem>>, %arg9: memref<8x8x256xf32, #tpu.memory_space<vmem>>, %arg10: memref<8x128xf32, #tpu.memory_space<vmem>>, %arg11: memref<8x128xf32, #tpu.memory_space<vmem>>, %arg12: memref<64x512xf32, #tpu.memory_space<vmem>>, %arg13: memref<64x128xf32, #tpu.memory_space<vmem>>) attributes {dimension_semantics = [#tpu.dimension_semantics<arbitrary>], iteration_bounds = array<i64: 1>, scalar_prefetch = 0 : i64, scratch_operands = 2 : i64, tpu.core_type = #tpu.core_type<tc>, window_params = [{pipeline_mode = #tpu.pipeline_mode<synchronous>, transform_indices = @transform_0, window_bounds = array<i64: 64, 64>}, {pipeline_mode = #tpu.pipeline_mode<synchronous>, transform_indices = @transform_1, window_bounds = array<i64: 8, 128>}, {pipeline_mode = #tpu.pipeline_mode<synchronous>, transform_indices = @transform_2, window_bounds = array<i64: 8, 128>}, {pipeline_mode = #tpu.pipeline_mode<synchronous>, transform_indices = @transform_3, window_bounds = array<i64: 64, 512>}, {pipeline_mode = #tpu.pipeline_mode<synchronous>, transform_indices = @transform_4, window_bounds = array<i64: 128, 512>}, {pipeline_mode = #tpu.pipeline_mode<synchronous>, transform_indices = @transform_5, window_bounds = array<i64: 1, 512>}, {pipeline_mode = #tpu.pipeline_mode<synchronous>, transform_indices = @transform_6, window_bounds = array<i64: 128, 256>}, {pipeline_mode = #tpu.pipeline_mode<synchronous>, transform_indices = @transform_7, window_bounds = array<i64: 1, 256>}, {pipeline_mode = #tpu.pipeline_mode<synchronous>, transform_indices = @transform_8, window_bounds = array<i64: 8, 8, 256>}, {pipeline_mode = #tpu.pipeline_mode<synchronous>, transform_indices = @transform_9, window_bounds = array<i64: 8, 128>}, {pipeline_mode = #tpu.pipeline_mode<synchronous>, transform_indices = @transform_10, window_bounds = array<i64: 8, 128>}]} {
    %c0 = arith.constant 0 : index
    %c0_0 = arith.constant 0 : index
    %0 = vector.load %arg1[%c0, %c0_0] : memref<64x64xbf16, #tpu.memory_space<vmem>>, vector<64x64xbf16>
    %c0_1 = arith.constant 0 : index
    %c0_2 = arith.constant 0 : index
    %1 = vector.load %arg4[%c0_1, %c0_2] : memref<64x512xbf16, #tpu.memory_space<vmem>>, vector<64x512xbf16>
    %cst = arith.constant dense<0.000000e+00> : vector<64x512xf32>
    %2 = tpu.matmul %0, %1, %cst {dimension_numbers = #tpu.dot_dimension_numbers<[1], [0], [0], [1], [0, 0, 1, 1], [], []>} : vector<64x64xbf16>, vector<64x512xbf16>, vector<64x512xf32> -> vector<64x512xf32>
    %c0_3 = arith.constant 0 : index
    %c0_4 = arith.constant 0 : index
    %3 = vector.load %arg6[%c0_3, %c0_4] : memref<1x512xf32, #tpu.memory_space<vmem>>, vector<1x512xf32>
    %4 = vector.broadcast %3 : vector<1x512xf32> to vector<64x512xf32>
    %5 = arith.addf %2, %4 : vector<64x512xf32>
    %c0_5 = arith.constant 0 : index
    %c0_6 = arith.constant 0 : index
    %6 = vector.load %arg12[%c0_5, %c0_6] : memref<64x512xf32, #tpu.memory_space<vmem>>, vector<64x512xf32>
    tpu.vector_store %arg12[%c0_5, %c0_6], %5 {strides = array<i32>} : memref<64x512xf32, #tpu.memory_space<vmem>>, vector<64x512xf32>,
    %c0_7 = arith.constant 0 : index
    %c0_8 = arith.constant 0 : index
    %7 = vector.load %arg2[%c0_7, %c0_8] : memref<8x128xf32, #tpu.memory_space<vmem>>, vector<8x128xf32>
    %c0_9 = arith.constant 0 : index
    %c0_10 = arith.constant 0 : index
    %8 = vector.load %arg3[%c0_9, %c0_10] : memref<8x128xf32, #tpu.memory_space<vmem>>, vector<8x128xf32>
    %c0_i32 = arith.constant 0 : i32
    %c8_i32 = arith.constant 8 : i32
    %9 = arith.muli %c0_i32, %c8_i32 : i32
    %10 = tpu.assume_multiple %9, 8 : i32
    %11 = arith.index_cast %10 : i32 to index
    %c0_11 = arith.constant 0 : index
    %12 = vector.load %arg12[%11, %c0_11] : memref<64x512xf32, #tpu.memory_space<vmem>>, vector<8x512xf32>
    %13 = arith.truncf %7 : vector<8x128xf32> to vector<8x128xbf16>
    %c0_12 = arith.constant 0 : index
    %c0_13 = arith.constant 0 : index
    %14 = vector.load %arg5[%c0_12, %c0_13] : memref<128x512xbf16, #tpu.memory_space<vmem>>, vector<128x512xbf16>
    %cst_14 = arith.constant dense<0.000000e+00> : vector<8x512xf32>
    %15 = tpu.matmul %13, %14, %cst_14 {dimension_numbers = #tpu.dot_dimension_numbers<[1], [0], [0], [1], [0, 0, 1, 1], [], []>} : vector<8x128xbf16>, vector<128x512xbf16>, vector<8x512xf32> -> vector<8x512xf32>
    %16 = arith.addf %12, %15 : vector<8x512xf32>
    %17 = vector.extract_strided_slice %16 {offsets = [0, 0], sizes = [8, 128], strides = [1, 1]} : vector<8x512xf32> to vector<8x128xf32>
    %cst_15 = arith.constant 0.000000e+00 : f32
    %18 = vector.broadcast %cst_15 : f32 to vector<8x128xf32>
    %19 = arith.subf %18, %17 : vector<8x128xf32>
    %20 = math.exp %19 : vector<8x128xf32>
    %cst_16 = arith.constant 1.000000e+00 : f32
    %21 = vector.broadcast %cst_16 : f32 to vector<8x128xf32>
    %22 = arith.addf %21, %20 : vector<8x128xf32>
    %23 = tpu.reciprocal %22 {approx = true} : vector<8x128xf32> -> vector<8x128xf32>
    %24 = vector.extract_strided_slice %16 {offsets = [0, 128], sizes = [8, 128], strides = [1, 1]} : vector<8x512xf32> to vector<8x128xf32>
    %cst_17 = arith.constant 0.000000e+00 : f32
    %25 = vector.broadcast %cst_17 : f32 to vector<8x128xf32>
    %26 = arith.subf %25, %24 : vector<8x128xf32>
    %27 = math.exp %26 : vector<8x128xf32>
    %cst_18 = arith.constant 1.000000e+00 : f32
    %28 = vector.broadcast %cst_18 : f32 to vector<8x128xf32>
    %29 = arith.addf %28, %27 : vector<8x128xf32>
    %30 = tpu.reciprocal %29 {approx = true} : vector<8x128xf32> -> vector<8x128xf32>
    %31 = vector.extract_strided_slice %16 {offsets = [0, 256], sizes = [8, 128], strides = [1, 1]} : vector<8x512xf32> to vector<8x128xf32>
    %32 = math.tanh %31 : vector<8x128xf32>
    %33 = vector.extract_strided_slice %16 {offsets = [0, 384], sizes = [8, 128], strides = [1, 1]} : vector<8x512xf32> to vector<8x128xf32>
    %cst_19 = arith.constant 0.000000e+00 : f32
    %34 = vector.broadcast %cst_19 : f32 to vector<8x128xf32>
    %35 = arith.subf %34, %33 : vector<8x128xf32>
    %36 = math.exp %35 : vector<8x128xf32>
    %cst_20 = arith.constant 1.000000e+00 : f32
    %37 = vector.broadcast %cst_20 : f32 to vector<8x128xf32>
    %38 = arith.addf %37, %36 : vector<8x128xf32>
    %39 = tpu.reciprocal %38 {approx = true} : vector<8x128xf32> -> vector<8x128xf32>
    %40 = arith.mulf %30, %8 : vector<8x128xf32>
    %41 = arith.mulf %23, %32 : vector<8x128xf32>
    %42 = arith.addf %40, %41 : vector<8x128xf32>
    %43 = math.tanh %42 : vector<8x128xf32>
    %44 = arith.mulf %39, %43 : vector<8x128xf32>
    %45 = arith.index_cast %10 : i32 to index
    %c0_21 = arith.constant 0 : index
    %46 = vector.load %arg13[%45, %c0_21] : memref<64x128xf32, #tpu.memory_space<vmem>>, vector<8x128xf32>
    tpu.vector_store %arg13[%45, %c0_21], %44 {strides = array<i32>} : memref<64x128xf32, #tpu.memory_space<vmem>>, vector<8x128xf32>,
    %c1_i32 = arith.constant 1 : i32
    %c8_i32_22 = arith.constant 8 : i32
    %47 = arith.muli %c1_i32, %c8_i32_22 : i32
    %48 = tpu.assume_multiple %47, 8 : i32
    %49 = arith.index_cast %48 : i32 to index
    %c0_23 = arith.constant 0 : index
    %50 = vector.load %arg12[%49, %c0_23] : memref<64x512xf32, #tpu.memory_space<vmem>>, vector<8x512xf32>
    %51 = arith.truncf %44 : vector<8x128xf32> to vector<8x128xbf16>
    %c0_24 = arith.constant 0 : index
    %c0_25 = arith.constant 0 : index
    %52 = vector.load %arg5[%c0_24, %c0_25] : memref<128x512xbf16, #tpu.memory_space<vmem>>, vector<128x512xbf16>
    %cst_26 = arith.constant dense<0.000000e+00> : vector<8x512xf32>
    %53 = tpu.matmul %51, %52, %cst_26 {dimension_numbers = #tpu.dot_dimension_numbers<[1], [0], [0], [1], [0, 0, 1, 1], [], []>} : vector<8x128xbf16>, vector<128x512xbf16>, vector<8x512xf32> -> vector<8x512xf32>
    %54 = arith.addf %50, %53 : vector<8x512xf32>
    %55 = vector.extract_strided_slice %54 {offsets = [0, 0], sizes = [8, 128], strides = [1, 1]} : vector<8x512xf32> to vector<8x128xf32>
    %cst_27 = arith.constant 0.000000e+00 : f32
    %56 = vector.broadcast %cst_27 : f32 to vector<8x128xf32>
    %57 = arith.subf %56, %55 : vector<8x128xf32>
    %58 = math.exp %57 : vector<8x128xf32>
    %cst_28 = arith.constant 1.000000e+00 : f32
    %59 = vector.broadcast %cst_28 : f32 to vector<8x128xf32>
    %60 = arith.addf %59, %58 : vector<8x128xf32>
    %61 = tpu.reciprocal %60 {approx = true} : vector<8x128xf32> -> vector<8x128xf32>
    %62 = vector.extract_strided_slice %54 {offsets = [0, 128], sizes = [8, 128], strides = [1, 1]} : vector<8x512xf32> to vector<8x128xf32>
    %cst_29 = arith.constant 0.000000e+00 : f32
    %63 = vector.broadcast %cst_29 : f32 to vector<8x128xf32>
    %64 = arith.subf %63, %62 : vector<8x128xf32>
    %65 = math.exp %64 : vector<8x128xf32>
    %cst_30 = arith.constant 1.000000e+00 : f32
    %66 = vector.broadcast %cst_30 : f32 to vector<8x128xf32>
    %67 = arith.addf %66, %65 : vector<8x128xf32>
    %68 = tpu.reciprocal %67 {approx = true} : vector<8x128xf32> -> vector<8x128xf32>
    %69 = vector.extract_strided_slice %54 {offsets = [0, 256], sizes = [8, 128], strides = [1, 1]} : vector<8x512xf32> to vector<8x128xf32>
    %70 = math.tanh %69 : vector<8x128xf32>
    %71 = vector.extract_strided_slice %54 {offsets = [0, 384], sizes = [8, 128], strides = [1, 1]} : vector<8x512xf32> to vector<8x128xf32>
    %cst_31 = arith.constant 0.000000e+00 : f32
    %72 = vector.broadcast %cst_31 : f32 to vector<8x128xf32>
    %73 = arith.subf %72, %71 : vector<8x128xf32>
    %74 = math.exp %73 : vector<8x128xf32>
    %cst_32 = arith.constant 1.000000e+00 : f32
    %75 = vector.broadcast %cst_32 : f32 to vector<8x128xf32>
    %76 = arith.addf %75, %74 : vector<8x128xf32>
    %77 = tpu.reciprocal %76 {approx = true} : vector<8x128xf32> -> vector<8x128xf32>
    %78 = arith.mulf %68, %42 : vector<8x128xf32>
    %79 = arith.mulf %61, %70 : vector<8x128xf32>
    %80 = arith.addf %78, %79 : vector<8x128xf32>
    %81 = math.tanh %80 : vector<8x128xf32>
    %82 = arith.mulf %77, %81 : vector<8x128xf32>
    %83 = arith.index_cast %48 : i32 to index
    %c0_33 = arith.constant 0 : index
    %84 = vector.load %arg13[%83, %c0_33] : memref<64x128xf32, #tpu.memory_space<vmem>>, vector<8x128xf32>
    tpu.vector_store %arg13[%83, %c0_33], %82 {strides = array<i32>} : memref<64x128xf32, #tpu.memory_space<vmem>>, vector<8x128xf32>,
    %c2_i32 = arith.constant 2 : i32
    %c8_i32_34 = arith.constant 8 : i32
    %85 = arith.muli %c2_i32, %c8_i32_34 : i32
    %86 = tpu.assume_multiple %85, 8 : i32
    %87 = arith.index_cast %86 : i32 to index
    %c0_35 = arith.constant 0 : index
    %88 = vector.load %arg12[%87, %c0_35] : memref<64x512xf32, #tpu.memory_space<vmem>>, vector<8x512xf32>
    %89 = arith.truncf %82 : vector<8x128xf32> to vector<8x128xbf16>
    %c0_36 = arith.constant 0 : index
    %c0_37 = arith.constant 0 : index
    %90 = vector.load %arg5[%c0_36, %c0_37] : memref<128x512xbf16, #tpu.memory_space<vmem>>, vector<128x512xbf16>
    %cst_38 = arith.constant dense<0.000000e+00> : vector<8x512xf32>
    %91 = tpu.matmul %89, %90, %cst_38 {dimension_numbers = #tpu.dot_dimension_numbers<[1], [0], [0], [1], [0, 0, 1, 1], [], []>} : vector<8x128xbf16>, vector<128x512xbf16>, vector<8x512xf32> -> vector<8x512xf32>
    %92 = arith.addf %88, %91 : vector<8x512xf32>
    %93 = vector.extract_strided_slice %92 {offsets = [0, 0], sizes = [8, 128], strides = [1, 1]} : vector<8x512xf32> to vector<8x128xf32>
    %cst_39 = arith.constant 0.000000e+00 : f32
    %94 = vector.broadcast %cst_39 : f32 to vector<8x128xf32>
    %95 = arith.subf %94, %93 : vector<8x128xf32>
    %96 = math.exp %95 : vector<8x128xf32>
    %cst_40 = arith.constant 1.000000e+00 : f32
    %97 = vector.broadcast %cst_40 : f32 to vector<8x128xf32>
    %98 = arith.addf %97, %96 : vector<8x128xf32>
    %99 = tpu.reciprocal %98 {approx = true} : vector<8x128xf32> -> vector<8x128xf32>
    %100 = vector.extract_strided_slice %92 {offsets = [0, 128], sizes = [8, 128], strides = [1, 1]} : vector<8x512xf32> to vector<8x128xf32>
    %cst_41 = arith.constant 0.000000e+00 : f32
    %101 = vector.broadcast %cst_41 : f32 to vector<8x128xf32>
    %102 = arith.subf %101, %100 : vector<8x128xf32>
    %103 = math.exp %102 : vector<8x128xf32>
    %cst_42 = arith.constant 1.000000e+00 : f32
    %104 = vector.broadcast %cst_42 : f32 to vector<8x128xf32>
    %105 = arith.addf %104, %103 : vector<8x128xf32>
    %106 = tpu.reciprocal %105 {approx = true} : vector<8x128xf32> -> vector<8x128xf32>
    %107 = vector.extract_strided_slice %92 {offsets = [0, 256], sizes = [8, 128], strides = [1, 1]} : vector<8x512xf32> to vector<8x128xf32>
    %108 = math.tanh %107 : vector<8x128xf32>
    %109 = vector.extract_strided_slice %92 {offsets = [0, 384], sizes = [8, 128], strides = [1, 1]} : vector<8x512xf32> to vector<8x128xf32>
    %cst_43 = arith.constant 0.000000e+00 : f32
    %110 = vector.broadcast %cst_43 : f32 to vector<8x128xf32>
    %111 = arith.subf %110, %109 : vector<8x128xf32>
    %112 = math.exp %111 : vector<8x128xf32>
    %cst_44 = arith.constant 1.000000e+00 : f32
    %113 = vector.broadcast %cst_44 : f32 to vector<8x128xf32>
    %114 = arith.addf %113, %112 : vector<8x128xf32>
    %115 = tpu.reciprocal %114 {approx = true} : vector<8x128xf32> -> vector<8x128xf32>
    %116 = arith.mulf %106, %80 : vector<8x128xf32>
    %117 = arith.mulf %99, %108 : vector<8x128xf32>
    %118 = arith.addf %116, %117 : vector<8x128xf32>
    %119 = math.tanh %118 : vector<8x128xf32>
    %120 = arith.mulf %115, %119 : vector<8x128xf32>
    %121 = arith.index_cast %86 : i32 to index
    %c0_45 = arith.constant 0 : index
    %122 = vector.load %arg13[%121, %c0_45] : memref<64x128xf32, #tpu.memory_space<vmem>>, vector<8x128xf32>
    tpu.vector_store %arg13[%121, %c0_45], %120 {strides = array<i32>} : memref<64x128xf32, #tpu.memory_space<vmem>>, vector<8x128xf32>,
    %c3_i32 = arith.constant 3 : i32
    %c8_i32_46 = arith.constant 8 : i32
    %123 = arith.muli %c3_i32, %c8_i32_46 : i32
    %124 = tpu.assume_multiple %123, 8 : i32
    %125 = arith.index_cast %124 : i32 to index
    %c0_47 = arith.constant 0 : index
    %126 = vector.load %arg12[%125, %c0_47] : memref<64x512xf32, #tpu.memory_space<vmem>>, vector<8x512xf32>
    %127 = arith.truncf %120 : vector<8x128xf32> to vector<8x128xbf16>
    %c0_48 = arith.constant 0 : index
    %c0_49 = arith.constant 0 : index
    %128 = vector.load %arg5[%c0_48, %c0_49] : memref<128x512xbf16, #tpu.memory_space<vmem>>, vector<128x512xbf16>
    %cst_50 = arith.constant dense<0.000000e+00> : vector<8x512xf32>
    %129 = tpu.matmul %127, %128, %cst_50 {dimension_numbers = #tpu.dot_dimension_numbers<[1], [0], [0], [1], [0, 0, 1, 1], [], []>} : vector<8x128xbf16>, vector<128x512xbf16>, vector<8x512xf32> -> vector<8x512xf32>
    %130 = arith.addf %126, %129 : vector<8x512xf32>
    %131 = vector.extract_strided_slice %130 {offsets = [0, 0], sizes = [8, 128], strides = [1, 1]} : vector<8x512xf32> to vector<8x128xf32>
    %cst_51 = arith.constant 0.000000e+00 : f32
    %132 = vector.broadcast %cst_51 : f32 to vector<8x128xf32>
    %133 = arith.subf %132, %131 : vector<8x128xf32>
    %134 = math.exp %133 : vector<8x128xf32>
    %cst_52 = arith.constant 1.000000e+00 : f32
    %135 = vector.broadcast %cst_52 : f32 to vector<8x128xf32>
    %136 = arith.addf %135, %134 : vector<8x128xf32>
    %137 = tpu.reciprocal %136 {approx = true} : vector<8x128xf32> -> vector<8x128xf32>
    %138 = vector.extract_strided_slice %130 {offsets = [0, 128], sizes = [8, 128], strides = [1, 1]} : vector<8x512xf32> to vector<8x128xf32>
    %cst_53 = arith.constant 0.000000e+00 : f32
    %139 = vector.broadcast %cst_53 : f32 to vector<8x128xf32>
    %140 = arith.subf %139, %138 : vector<8x128xf32>
    %141 = math.exp %140 : vector<8x128xf32>
    %cst_54 = arith.constant 1.000000e+00 : f32
    %142 = vector.broadcast %cst_54 : f32 to vector<8x128xf32>
    %143 = arith.addf %142, %141 : vector<8x128xf32>
    %144 = tpu.reciprocal %143 {approx = true} : vector<8x128xf32> -> vector<8x128xf32>
    %145 = vector.extract_strided_slice %130 {offsets = [0, 256], sizes = [8, 128], strides = [1, 1]} : vector<8x512xf32> to vector<8x128xf32>
    %146 = math.tanh %145 : vector<8x128xf32>
    %147 = vector.extract_strided_slice %130 {offsets = [0, 384], sizes = [8, 128], strides = [1, 1]} : vector<8x512xf32> to vector<8x128xf32>
    %cst_55 = arith.constant 0.000000e+00 : f32
    %148 = vector.broadcast %cst_55 : f32 to vector<8x128xf32>
    %149 = arith.subf %148, %147 : vector<8x128xf32>
    %150 = math.exp %149 : vector<8x128xf32>
    %cst_56 = arith.constant 1.000000e+00 : f32
    %151 = vector.broadcast %cst_56 : f32 to vector<8x128xf32>
    %152 = arith.addf %151, %150 : vector<8x128xf32>
    %153 = tpu.reciprocal %152 {approx = true} : vector<8x128xf32> -> vector<8x128xf32>
    %154 = arith.mulf %144, %118 : vector<8x128xf32>
    %155 = arith.mulf %137, %146 : vector<8x128xf32>
    %156 = arith.addf %154, %155 : vector<8x128xf32>
    %157 = math.tanh %156 : vector<8x128xf32>
    %158 = arith.mulf %153, %157 : vector<8x128xf32>
    %159 = arith.index_cast %124 : i32 to index
    %c0_57 = arith.constant 0 : index
    %160 = vector.load %arg13[%159, %c0_57] : memref<64x128xf32, #tpu.memory_space<vmem>>, vector<8x128xf32>
    tpu.vector_store %arg13[%159, %c0_57], %158 {strides = array<i32>} : memref<64x128xf32, #tpu.memory_space<vmem>>, vector<8x128xf32>,
    %c4_i32 = arith.constant 4 : i32
    %c8_i32_58 = arith.constant 8 : i32
    %161 = arith.muli %c4_i32, %c8_i32_58 : i32
    %162 = tpu.assume_multiple %161, 8 : i32
    %163 = arith.index_cast %162 : i32 to index
    %c0_59 = arith.constant 0 : index
    %164 = vector.load %arg12[%163, %c0_59] : memref<64x512xf32, #tpu.memory_space<vmem>>, vector<8x512xf32>
    %165 = arith.truncf %158 : vector<8x128xf32> to vector<8x128xbf16>
    %c0_60 = arith.constant 0 : index
    %c0_61 = arith.constant 0 : index
    %166 = vector.load %arg5[%c0_60, %c0_61] : memref<128x512xbf16, #tpu.memory_space<vmem>>, vector<128x512xbf16>
    %cst_62 = arith.constant dense<0.000000e+00> : vector<8x512xf32>
    %167 = tpu.matmul %165, %166, %cst_62 {dimension_numbers = #tpu.dot_dimension_numbers<[1], [0], [0], [1], [0, 0, 1, 1], [], []>} : vector<8x128xbf16>, vector<128x512xbf16>, vector<8x512xf32> -> vector<8x512xf32>
    %168 = arith.addf %164, %167 : vector<8x512xf32>
    %169 = vector.extract_strided_slice %168 {offsets = [0, 0], sizes = [8, 128], strides = [1, 1]} : vector<8x512xf32> to vector<8x128xf32>
    %cst_63 = arith.constant 0.000000e+00 : f32
    %170 = vector.broadcast %cst_63 : f32 to vector<8x128xf32>
    %171 = arith.subf %170, %169 : vector<8x128xf32>
    %172 = math.exp %171 : vector<8x128xf32>
    %cst_64 = arith.constant 1.000000e+00 : f32
    %173 = vector.broadcast %cst_64 : f32 to vector<8x128xf32>
    %174 = arith.addf %173, %172 : vector<8x128xf32>
    %175 = tpu.reciprocal %174 {approx = true} : vector<8x128xf32> -> vector<8x128xf32>
    %176 = vector.extract_strided_slice %168 {offsets = [0, 128], sizes = [8, 128], strides = [1, 1]} : vector<8x512xf32> to vector<8x128xf32>
    %cst_65 = arith.constant 0.000000e+00 : f32
    %177 = vector.broadcast %cst_65 : f32 to vector<8x128xf32>
    %178 = arith.subf %177, %176 : vector<8x128xf32>
    %179 = math.exp %178 : vector<8x128xf32>
    %cst_66 = arith.constant 1.000000e+00 : f32
    %180 = vector.broadcast %cst_66 : f32 to vector<8x128xf32>
    %181 = arith.addf %180, %179 : vector<8x128xf32>
    %182 = tpu.reciprocal %181 {approx = true} : vector<8x128xf32> -> vector<8x128xf32>
    %183 = vector.extract_strided_slice %168 {offsets = [0, 256], sizes = [8, 128], strides = [1, 1]} : vector<8x512xf32> to vector<8x128xf32>
    %184 = math.tanh %183 : vector<8x128xf32>
    %185 = vector.extract_strided_slice %168 {offsets = [0, 384], sizes = [8, 128], strides = [1, 1]} : vector<8x512xf32> to vector<8x128xf32>
    %cst_67 = arith.constant 0.000000e+00 : f32
    %186 = vector.broadcast %cst_67 : f32 to vector<8x128xf32>
    %187 = arith.subf %186, %185 : vector<8x128xf32>
    %188 = math.exp %187 : vector<8x128xf32>
    %cst_68 = arith.constant 1.000000e+00 : f32
    %189 = vector.broadcast %cst_68 : f32 to vector<8x128xf32>
    %190 = arith.addf %189, %188 : vector<8x128xf32>
    %191 = tpu.reciprocal %190 {approx = true} : vector<8x128xf32> -> vector<8x128xf32>
    %192 = arith.mulf %182, %156 : vector<8x128xf32>
    %193 = arith.mulf %175, %184 : vector<8x128xf32>
    %194 = arith.addf %192, %193 : vector<8x128xf32>
    %195 = math.tanh %194 : vector<8x128xf32>
    %196 = arith.mulf %191, %195 : vector<8x128xf32>
    %197 = arith.index_cast %162 : i32 to index
    %c0_69 = arith.constant 0 : index
    %198 = vector.load %arg13[%197, %c0_69] : memref<64x128xf32, #tpu.memory_space<vmem>>, vector<8x128xf32>
    tpu.vector_store %arg13[%197, %c0_69], %196 {strides = array<i32>} : memref<64x128xf32, #tpu.memory_space<vmem>>, vector<8x128xf32>,
    %c5_i32 = arith.constant 5 : i32
    %c8_i32_70 = arith.constant 8 : i32
    %199 = arith.muli %c5_i32, %c8_i32_70 : i32
    %200 = tpu.assume_multiple %199, 8 : i32
    %201 = arith.index_cast %200 : i32 to index
    %c0_71 = arith.constant 0 : index
    %202 = vector.load %arg12[%201, %c0_71] : memref<64x512xf32, #tpu.memory_space<vmem>>, vector<8x512xf32>
    %203 = arith.truncf %196 : vector<8x128xf32> to vector<8x128xbf16>
    %c0_72 = arith.constant 0 : index
    %c0_73 = arith.constant 0 : index
    %204 = vector.load %arg5[%c0_72, %c0_73] : memref<128x512xbf16, #tpu.memory_space<vmem>>, vector<128x512xbf16>
    %cst_74 = arith.constant dense<0.000000e+00> : vector<8x512xf32>
    %205 = tpu.matmul %203, %204, %cst_74 {dimension_numbers = #tpu.dot_dimension_numbers<[1], [0], [0], [1], [0, 0, 1, 1], [], []>} : vector<8x128xbf16>, vector<128x512xbf16>, vector<8x512xf32> -> vector<8x512xf32>
    %206 = arith.addf %202, %205 : vector<8x512xf32>
    %207 = vector.extract_strided_slice %206 {offsets = [0, 0], sizes = [8, 128], strides = [1, 1]} : vector<8x512xf32> to vector<8x128xf32>
    %cst_75 = arith.constant 0.000000e+00 : f32
    %208 = vector.broadcast %cst_75 : f32 to vector<8x128xf32>
    %209 = arith.subf %208, %207 : vector<8x128xf32>
    %210 = math.exp %209 : vector<8x128xf32>
    %cst_76 = arith.constant 1.000000e+00 : f32
    %211 = vector.broadcast %cst_76 : f32 to vector<8x128xf32>
    %212 = arith.addf %211, %210 : vector<8x128xf32>
    %213 = tpu.reciprocal %212 {approx = true} : vector<8x128xf32> -> vector<8x128xf32>
    %214 = vector.extract_strided_slice %206 {offsets = [0, 128], sizes = [8, 128], strides = [1, 1]} : vector<8x512xf32> to vector<8x128xf32>
    %cst_77 = arith.constant 0.000000e+00 : f32
    %215 = vector.broadcast %cst_77 : f32 to vector<8x128xf32>
    %216 = arith.subf %215, %214 : vector<8x128xf32>
    %217 = math.exp %216 : vector<8x128xf32>
    %cst_78 = arith.constant 1.000000e+00 : f32
    %218 = vector.broadcast %cst_78 : f32 to vector<8x128xf32>
    %219 = arith.addf %218, %217 : vector<8x128xf32>
    %220 = tpu.reciprocal %219 {approx = true} : vector<8x128xf32> -> vector<8x128xf32>
    %221 = vector.extract_strided_slice %206 {offsets = [0, 256], sizes = [8, 128], strides = [1, 1]} : vector<8x512xf32> to vector<8x128xf32>
    %222 = math.tanh %221 : vector<8x128xf32>
    %223 = vector.extract_strided_slice %206 {offsets = [0, 384], sizes = [8, 128], strides = [1, 1]} : vector<8x512xf32> to vector<8x128xf32>
    %cst_79 = arith.constant 0.000000e+00 : f32
    %224 = vector.broadcast %cst_79 : f32 to vector<8x128xf32>
    %225 = arith.subf %224, %223 : vector<8x128xf32>
    %226 = math.exp %225 : vector<8x128xf32>
    %cst_80 = arith.constant 1.000000e+00 : f32
    %227 = vector.broadcast %cst_80 : f32 to vector<8x128xf32>
    %228 = arith.addf %227, %226 : vector<8x128xf32>
    %229 = tpu.reciprocal %228 {approx = true} : vector<8x128xf32> -> vector<8x128xf32>
    %230 = arith.mulf %220, %194 : vector<8x128xf32>
    %231 = arith.mulf %213, %222 : vector<8x128xf32>
    %232 = arith.addf %230, %231 : vector<8x128xf32>
    %233 = math.tanh %232 : vector<8x128xf32>
    %234 = arith.mulf %229, %233 : vector<8x128xf32>
    %235 = arith.index_cast %200 : i32 to index
    %c0_81 = arith.constant 0 : index
    %236 = vector.load %arg13[%235, %c0_81] : memref<64x128xf32, #tpu.memory_space<vmem>>, vector<8x128xf32>
    tpu.vector_store %arg13[%235, %c0_81], %234 {strides = array<i32>} : memref<64x128xf32, #tpu.memory_space<vmem>>, vector<8x128xf32>,
    %c6_i32 = arith.constant 6 : i32
    %c8_i32_82 = arith.constant 8 : i32
    %237 = arith.muli %c6_i32, %c8_i32_82 : i32
    %238 = tpu.assume_multiple %237, 8 : i32
    %239 = arith.index_cast %238 : i32 to index
    %c0_83 = arith.constant 0 : index
    %240 = vector.load %arg12[%239, %c0_83] : memref<64x512xf32, #tpu.memory_space<vmem>>, vector<8x512xf32>
    %241 = arith.truncf %234 : vector<8x128xf32> to vector<8x128xbf16>
    %c0_84 = arith.constant 0 : index
    %c0_85 = arith.constant 0 : index
    %242 = vector.load %arg5[%c0_84, %c0_85] : memref<128x512xbf16, #tpu.memory_space<vmem>>, vector<128x512xbf16>
    %cst_86 = arith.constant dense<0.000000e+00> : vector<8x512xf32>
    %243 = tpu.matmul %241, %242, %cst_86 {dimension_numbers = #tpu.dot_dimension_numbers<[1], [0], [0], [1], [0, 0, 1, 1], [], []>} : vector<8x128xbf16>, vector<128x512xbf16>, vector<8x512xf32> -> vector<8x512xf32>
    %244 = arith.addf %240, %243 : vector<8x512xf32>
    %245 = vector.extract_strided_slice %244 {offsets = [0, 0], sizes = [8, 128], strides = [1, 1]} : vector<8x512xf32> to vector<8x128xf32>
    %cst_87 = arith.constant 0.000000e+00 : f32
    %246 = vector.broadcast %cst_87 : f32 to vector<8x128xf32>
    %247 = arith.subf %246, %245 : vector<8x128xf32>
    %248 = math.exp %247 : vector<8x128xf32>
    %cst_88 = arith.constant 1.000000e+00 : f32
    %249 = vector.broadcast %cst_88 : f32 to vector<8x128xf32>
    %250 = arith.addf %249, %248 : vector<8x128xf32>
    %251 = tpu.reciprocal %250 {approx = true} : vector<8x128xf32> -> vector<8x128xf32>
    %252 = vector.extract_strided_slice %244 {offsets = [0, 128], sizes = [8, 128], strides = [1, 1]} : vector<8x512xf32> to vector<8x128xf32>
    %cst_89 = arith.constant 0.000000e+00 : f32
    %253 = vector.broadcast %cst_89 : f32 to vector<8x128xf32>
    %254 = arith.subf %253, %252 : vector<8x128xf32>
    %255 = math.exp %254 : vector<8x128xf32>
    %cst_90 = arith.constant 1.000000e+00 : f32
    %256 = vector.broadcast %cst_90 : f32 to vector<8x128xf32>
    %257 = arith.addf %256, %255 : vector<8x128xf32>
    %258 = tpu.reciprocal %257 {approx = true} : vector<8x128xf32> -> vector<8x128xf32>
    %259 = vector.extract_strided_slice %244 {offsets = [0, 256], sizes = [8, 128], strides = [1, 1]} : vector<8x512xf32> to vector<8x128xf32>
    %260 = math.tanh %259 : vector<8x128xf32>
    %261 = vector.extract_strided_slice %244 {offsets = [0, 384], sizes = [8, 128], strides = [1, 1]} : vector<8x512xf32> to vector<8x128xf32>
    %cst_91 = arith.constant 0.000000e+00 : f32
    %262 = vector.broadcast %cst_91 : f32 to vector<8x128xf32>
    %263 = arith.subf %262, %261 : vector<8x128xf32>
    %264 = math.exp %263 : vector<8x128xf32>
    %cst_92 = arith.constant 1.000000e+00 : f32
    %265 = vector.broadcast %cst_92 : f32 to vector<8x128xf32>
    %266 = arith.addf %265, %264 : vector<8x128xf32>
    %267 = tpu.reciprocal %266 {approx = true} : vector<8x128xf32> -> vector<8x128xf32>
    %268 = arith.mulf %258, %232 : vector<8x128xf32>
    %269 = arith.mulf %251, %260 : vector<8x128xf32>
    %270 = arith.addf %268, %269 : vector<8x128xf32>
    %271 = math.tanh %270 : vector<8x128xf32>
    %272 = arith.mulf %267, %271 : vector<8x128xf32>
    %273 = arith.index_cast %238 : i32 to index
    %c0_93 = arith.constant 0 : index
    %274 = vector.load %arg13[%273, %c0_93] : memref<64x128xf32, #tpu.memory_space<vmem>>, vector<8x128xf32>
    tpu.vector_store %arg13[%273, %c0_93], %272 {strides = array<i32>} : memref<64x128xf32, #tpu.memory_space<vmem>>, vector<8x128xf32>,
    %c7_i32 = arith.constant 7 : i32
    %c8_i32_94 = arith.constant 8 : i32
    %275 = arith.muli %c7_i32, %c8_i32_94 : i32
    %276 = tpu.assume_multiple %275, 8 : i32
    %277 = arith.index_cast %276 : i32 to index
    %c0_95 = arith.constant 0 : index
    %278 = vector.load %arg12[%277, %c0_95] : memref<64x512xf32, #tpu.memory_space<vmem>>, vector<8x512xf32>
    %279 = arith.truncf %272 : vector<8x128xf32> to vector<8x128xbf16>
    %c0_96 = arith.constant 0 : index
    %c0_97 = arith.constant 0 : index
    %280 = vector.load %arg5[%c0_96, %c0_97] : memref<128x512xbf16, #tpu.memory_space<vmem>>, vector<128x512xbf16>
    %cst_98 = arith.constant dense<0.000000e+00> : vector<8x512xf32>
    %281 = tpu.matmul %279, %280, %cst_98 {dimension_numbers = #tpu.dot_dimension_numbers<[1], [0], [0], [1], [0, 0, 1, 1], [], []>} : vector<8x128xbf16>, vector<128x512xbf16>, vector<8x512xf32> -> vector<8x512xf32>
    %282 = arith.addf %278, %281 : vector<8x512xf32>
    %283 = vector.extract_strided_slice %282 {offsets = [0, 0], sizes = [8, 128], strides = [1, 1]} : vector<8x512xf32> to vector<8x128xf32>
    %cst_99 = arith.constant 0.000000e+00 : f32
    %284 = vector.broadcast %cst_99 : f32 to vector<8x128xf32>
    %285 = arith.subf %284, %283 : vector<8x128xf32>
    %286 = math.exp %285 : vector<8x128xf32>
    %cst_100 = arith.constant 1.000000e+00 : f32
    %287 = vector.broadcast %cst_100 : f32 to vector<8x128xf32>
    %288 = arith.addf %287, %286 : vector<8x128xf32>
    %289 = tpu.reciprocal %288 {approx = true} : vector<8x128xf32> -> vector<8x128xf32>
    %290 = vector.extract_strided_slice %282 {offsets = [0, 128], sizes = [8, 128], strides = [1, 1]} : vector<8x512xf32> to vector<8x128xf32>
    %cst_101 = arith.constant 0.000000e+00 : f32
    %291 = vector.broadcast %cst_101 : f32 to vector<8x128xf32>
    %292 = arith.subf %291, %290 : vector<8x128xf32>
    %293 = math.exp %292 : vector<8x128xf32>
    %cst_102 = arith.constant 1.000000e+00 : f32
    %294 = vector.broadcast %cst_102 : f32 to vector<8x128xf32>
    %295 = arith.addf %294, %293 : vector<8x128xf32>
    %296 = tpu.reciprocal %295 {approx = true} : vector<8x128xf32> -> vector<8x128xf32>
    %297 = vector.extract_strided_slice %282 {offsets = [0, 256], sizes = [8, 128], strides = [1, 1]} : vector<8x512xf32> to vector<8x128xf32>
    %298 = math.tanh %297 : vector<8x128xf32>
    %299 = vector.extract_strided_slice %282 {offsets = [0, 384], sizes = [8, 128], strides = [1, 1]} : vector<8x512xf32> to vector<8x128xf32>
    %cst_103 = arith.constant 0.000000e+00 : f32
    %300 = vector.broadcast %cst_103 : f32 to vector<8x128xf32>
    %301 = arith.subf %300, %299 : vector<8x128xf32>
    %302 = math.exp %301 : vector<8x128xf32>
    %cst_104 = arith.constant 1.000000e+00 : f32
    %303 = vector.broadcast %cst_104 : f32 to vector<8x128xf32>
    %304 = arith.addf %303, %302 : vector<8x128xf32>
    %305 = tpu.reciprocal %304 {approx = true} : vector<8x128xf32> -> vector<8x128xf32>
    %306 = arith.mulf %296, %270 : vector<8x128xf32>
    %307 = arith.mulf %289, %298 : vector<8x128xf32>
    %308 = arith.addf %306, %307 : vector<8x128xf32>
    %309 = math.tanh %308 : vector<8x128xf32>
    %310 = arith.mulf %305, %309 : vector<8x128xf32>
    %311 = arith.index_cast %276 : i32 to index
    %c0_105 = arith.constant 0 : index
    %312 = vector.load %arg13[%311, %c0_105] : memref<64x128xf32, #tpu.memory_space<vmem>>, vector<8x128xf32>
    tpu.vector_store %arg13[%311, %c0_105], %310 {strides = array<i32>} : memref<64x128xf32, #tpu.memory_space<vmem>>, vector<8x128xf32>,
    %c8_i32_106 = arith.constant 8 : i32
    %c0_107 = arith.constant 0 : index
    %c0_108 = arith.constant 0 : index
    %313 = vector.load %arg10[%c0_107, %c0_108] : memref<8x128xf32, #tpu.memory_space<vmem>>, vector<8x128xf32>
    tpu.vector_store %arg10[%c0_107, %c0_108], %310 {strides = array<i32>} : memref<8x128xf32, #tpu.memory_space<vmem>>, vector<8x128xf32>,
    %c0_109 = arith.constant 0 : index
    %c0_110 = arith.constant 0 : index
    %314 = vector.load %arg11[%c0_109, %c0_110] : memref<8x128xf32, #tpu.memory_space<vmem>>, vector<8x128xf32>
    tpu.vector_store %arg11[%c0_109, %c0_110], %308 {strides = array<i32>} : memref<8x128xf32, #tpu.memory_space<vmem>>, vector<8x128xf32>,
    %c0_111 = arith.constant 0 : index
    %c0_112 = arith.constant 0 : index
    %315 = vector.load %arg13[%c0_111, %c0_112] : memref<64x128xf32, #tpu.memory_space<vmem>>, vector<64x128xf32>
    %316 = arith.truncf %315 : vector<64x128xf32> to vector<64x128xbf16>
    %c0_113 = arith.constant 0 : index
    %c0_114 = arith.constant 0 : index
    %317 = vector.load %arg7[%c0_113, %c0_114] : memref<128x256xbf16, #tpu.memory_space<vmem>>, vector<128x256xbf16>
    %cst_115 = arith.constant dense<0.000000e+00> : vector<64x256xf32>
    %318 = tpu.matmul %316, %317, %cst_115 {dimension_numbers = #tpu.dot_dimension_numbers<[1], [0], [0], [1], [0, 0, 1, 1], [], []>} : vector<64x128xbf16>, vector<128x256xbf16>, vector<64x256xf32> -> vector<64x256xf32>
    %c0_116 = arith.constant 0 : index
    %c0_117 = arith.constant 0 : index
    %319 = vector.load %arg8[%c0_116, %c0_117] : memref<1x256xf32, #tpu.memory_space<vmem>>, vector<1x256xf32>
    %320 = vector.broadcast %319 : vector<1x256xf32> to vector<64x256xf32>
    %321 = arith.addf %318, %320 : vector<64x256xf32>
    %322 = vector.extract_strided_slice %321 {offsets = [0, 0], sizes = [8, 256], strides = [1, 1]} : vector<64x256xf32> to vector<8x256xf32>
    %c0_118 = arith.constant 0 : index
    %c0_119 = arith.constant 0 : index
    %c0_120 = arith.constant 0 : index
    %323 = vector.load %arg9[%c0_118, %c0_119, %c0_120] : memref<8x8x256xf32, #tpu.memory_space<vmem>>, vector<8x1x256xf32>
    %324 = vector.shape_cast %323 : vector<8x1x256xf32> to vector<8x256xf32>
    %325 = vector.shape_cast %322 : vector<8x256xf32> to vector<8x1x256xf32>
    tpu.vector_store %arg9[%c0_118, %c0_119, %c0_120], %325 {strides = array<i32>} : memref<8x8x256xf32, #tpu.memory_space<vmem>>, vector<8x1x256xf32>,
    %326 = vector.extract_strided_slice %321 {offsets = [8, 0], sizes = [8, 256], strides = [1, 1]} : vector<64x256xf32> to vector<8x256xf32>
    %c0_121 = arith.constant 0 : index
    %c1 = arith.constant 1 : index
    %c0_122 = arith.constant 0 : index
    %327 = vector.load %arg9[%c0_121, %c1, %c0_122] : memref<8x8x256xf32, #tpu.memory_space<vmem>>, vector<8x1x256xf32>
    %328 = vector.shape_cast %327 : vector<8x1x256xf32> to vector<8x256xf32>
    %329 = vector.shape_cast %326 : vector<8x256xf32> to vector<8x1x256xf32>
    tpu.vector_store %arg9[%c0_121, %c1, %c0_122], %329 {strides = array<i32>} : memref<8x8x256xf32, #tpu.memory_space<vmem>>, vector<8x1x256xf32>,
    %330 = vector.extract_strided_slice %321 {offsets = [16, 0], sizes = [8, 256], strides = [1, 1]} : vector<64x256xf32> to vector<8x256xf32>
    %c0_123 = arith.constant 0 : index
    %c2 = arith.constant 2 : index
    %c0_124 = arith.constant 0 : index
    %331 = vector.load %arg9[%c0_123, %c2, %c0_124] : memref<8x8x256xf32, #tpu.memory_space<vmem>>, vector<8x1x256xf32>
    %332 = vector.shape_cast %331 : vector<8x1x256xf32> to vector<8x256xf32>
    %333 = vector.shape_cast %330 : vector<8x256xf32> to vector<8x1x256xf32>
    tpu.vector_store %arg9[%c0_123, %c2, %c0_124], %333 {strides = array<i32>} : memref<8x8x256xf32, #tpu.memory_space<vmem>>, vector<8x1x256xf32>,
    %334 = vector.extract_strided_slice %321 {offsets = [24, 0], sizes = [8, 256], strides = [1, 1]} : vector<64x256xf32> to vector<8x256xf32>
    %c0_125 = arith.constant 0 : index
    %c3 = arith.constant 3 : index
    %c0_126 = arith.constant 0 : index
    %335 = vector.load %arg9[%c0_125, %c3, %c0_126] : memref<8x8x256xf32, #tpu.memory_space<vmem>>, vector<8x1x256xf32>
    %336 = vector.shape_cast %335 : vector<8x1x256xf32> to vector<8x256xf32>
    %337 = vector.shape_cast %334 : vector<8x256xf32> to vector<8x1x256xf32>
    tpu.vector_store %arg9[%c0_125, %c3, %c0_126], %337 {strides = array<i32>} : memref<8x8x256xf32, #tpu.memory_space<vmem>>, vector<8x1x256xf32>,
    %338 = vector.extract_strided_slice %321 {offsets = [32, 0], sizes = [8, 256], strides = [1, 1]} : vector<64x256xf32> to vector<8x256xf32>
    %c0_127 = arith.constant 0 : index
    %c4 = arith.constant 4 : index
    %c0_128 = arith.constant 0 : index
    %339 = vector.load %arg9[%c0_127, %c4, %c0_128] : memref<8x8x256xf32, #tpu.memory_space<vmem>>, vector<8x1x256xf32>
    %340 = vector.shape_cast %339 : vector<8x1x256xf32> to vector<8x256xf32>
    %341 = vector.shape_cast %338 : vector<8x256xf32> to vector<8x1x256xf32>
    tpu.vector_store %arg9[%c0_127, %c4, %c0_128], %341 {strides = array<i32>} : memref<8x8x256xf32, #tpu.memory_space<vmem>>, vector<8x1x256xf32>,
    %342 = vector.extract_strided_slice %321 {offsets = [40, 0], sizes = [8, 256], strides = [1, 1]} : vector<64x256xf32> to vector<8x256xf32>
    %c0_129 = arith.constant 0 : index
    %c5 = arith.constant 5 : index
    %c0_130 = arith.constant 0 : index
    %343 = vector.load %arg9[%c0_129, %c5, %c0_130] : memref<8x8x256xf32, #tpu.memory_space<vmem>>, vector<8x1x256xf32>
    %344 = vector.shape_cast %343 : vector<8x1x256xf32> to vector<8x256xf32>
    %345 = vector.shape_cast %342 : vector<8x256xf32> to vector<8x1x256xf32>
    tpu.vector_store %arg9[%c0_129, %c5, %c0_130], %345 {strides = array<i32>} : memref<8x8x256xf32, #tpu.memory_space<vmem>>, vector<8x1x256xf32>,
    %346 = vector.extract_strided_slice %321 {offsets = [48, 0], sizes = [8, 256], strides = [1, 1]} : vector<64x256xf32> to vector<8x256xf32>
    %c0_131 = arith.constant 0 : index
    %c6 = arith.constant 6 : index
    %c0_132 = arith.constant 0 : index
    %347 = vector.load %arg9[%c0_131, %c6, %c0_132] : memref<8x8x256xf32, #tpu.memory_space<vmem>>, vector<8x1x256xf32>
    %348 = vector.shape_cast %347 : vector<8x1x256xf32> to vector<8x256xf32>
    %349 = vector.shape_cast %346 : vector<8x256xf32> to vector<8x1x256xf32>
    tpu.vector_store %arg9[%c0_131, %c6, %c0_132], %349 {strides = array<i32>} : memref<8x8x256xf32, #tpu.memory_space<vmem>>, vector<8x1x256xf32>,
    %350 = vector.extract_strided_slice %321 {offsets = [56, 0], sizes = [8, 256], strides = [1, 1]} : vector<64x256xf32> to vector<8x256xf32>
    %c0_133 = arith.constant 0 : index
    %c7 = arith.constant 7 : index
    %c0_134 = arith.constant 0 : index
    %351 = vector.load %arg9[%c0_133, %c7, %c0_134] : memref<8x8x256xf32, #tpu.memory_space<vmem>>, vector<8x1x256xf32>
    %352 = vector.shape_cast %351 : vector<8x1x256xf32> to vector<8x256xf32>
    %353 = vector.shape_cast %350 : vector<8x256xf32> to vector<8x1x256xf32>
    tpu.vector_store %arg9[%c0_133, %c7, %c0_134], %353 {strides = array<i32>} : memref<8x8x256xf32, #tpu.memory_space<vmem>>, vector<8x1x256xf32>,
    return
  }
  func.func @transform_0(%arg0: i32) -> (i32, i32) {
    %c0_i32 = arith.constant 0 : i32
    %c0_i32_0 = arith.constant 0 : i32
    %c0_i32_1 = arith.constant 0 : i32
    return %c0_i32, %c0_i32_0 : i32, i32
  }
  func.func @transform_1(%arg0: i32) -> (i32, i32) {
    %c0_i32 = arith.constant 0 : i32
    %c0_i32_0 = arith.constant 0 : i32
    %c0_i32_1 = arith.constant 0 : i32
    return %c0_i32, %c0_i32_0 : i32, i32
  }
  func.func @transform_2(%arg0: i32) -> (i32, i32) {
    %c0_i32 = arith.constant 0 : i32
    %c0_i32_0 = arith.constant 0 : i32
    %c0_i32_1 = arith.constant 0 : i32
    return %c0_i32, %c0_i32_0 : i32, i32
  }
  func.func @transform_3(%arg0: i32) -> (i32, i32) {
    %c0_i32 = arith.constant 0 : i32
    %c0_i32_0 = arith.constant 0 : i32
    %c0_i32_1 = arith.constant 0 : i32
    return %c0_i32, %c0_i32_0 : i32, i32
  }
  func.func @transform_4(%arg0: i32) -> (i32, i32) {
    %c0_i32 = arith.constant 0 : i32
    %c0_i32_0 = arith.constant 0 : i32
    %c0_i32_1 = arith.constant 0 : i32
    return %c0_i32, %c0_i32_0 : i32, i32
  }
  func.func @transform_5(%arg0: i32) -> (i32, i32) {
    %c0_i32 = arith.constant 0 : i32
    %c0_i32_0 = arith.constant 0 : i32
    %c0_i32_1 = arith.constant 0 : i32
    return %c0_i32, %c0_i32_0 : i32, i32
  }
  func.func @transform_6(%arg0: i32) -> (i32, i32) {
    %c0_i32 = arith.constant 0 : i32
    %c0_i32_0 = arith.constant 0 : i32
    %c0_i32_1 = arith.constant 0 : i32
    return %c0_i32, %c0_i32_0 : i32, i32
  }
  func.func @transform_7(%arg0: i32) -> (i32, i32) {
    %c0_i32 = arith.constant 0 : i32
    %c0_i32_0 = arith.constant 0 : i32
    %c0_i32_1 = arith.constant 0 : i32
    return %c0_i32, %c0_i32_0 : i32, i32
  }
  func.func @transform_8(%arg0: i32) -> (i32, i32, i32) {
    %c0_i32 = arith.constant 0 : i32
    %c0_i32_0 = arith.constant 0 : i32
    %c0_i32_1 = arith.constant 0 : i32
    %c0_i32_2 = arith.constant 0 : i32
    return %c0_i32, %c0_i32_0, %c0_i32_1 : i32, i32, i32
  }
  func.func @transform_9(%arg0: i32) -> (i32, i32) {
    %c0_i32 = arith.constant 0 : i32
    %c0_i32_0 = arith.constant 0 : i32
    %c0_i32_1 = arith.constant 0 : i32
    return %c0_i32, %c0_i32_0 : i32, i32
  }
  func.func @transform_10(%arg0: i32) -> (i32, i32) {
    %c0_i32 = arith.constant 0 : i32
    %c0_i32_0 = arith.constant 0 : i32
    %c0_i32_1 = arith.constant 0 : i32
    return %c0_i32, %c0_i32_0 : i32, i32
  }
}

</mosaic_0001>

<bundles_post_ra>
// kernel: joke_generator_forward.1
= control target key start
LH: loop header
LB: loop body
LE: loop exit
PB: predicated region body
PF: predicated region fallthrough
CT: control target
= control target key end

     0   :  { %16 = vsyncpa [#allocation5], 0  ;;  %v5710_v2 = vmov 0   ;;  %vm181_vm0 = vcmask 523264   ;;  %s5696_s0 = inlined_call_operand.vmem [shape: bf16[64,64], index: 0, kind: input, shape index: {}]   ;;  %s5697_s1 = inlined_call_operand.vmem [shape: f32[8,128], index: 1, kind: input, shape index: {}, may-alias: {1,2}]   ;;  %s5698_s2 = inlined_call_operand.vmem [shape: f32[8,128], index: 2, kind: input, shape index: {}, may-alias: {1,2}]   ;;  %s5699_s3 = inlined_call_operand.vmem [shape: bf16[64,512], index: 3, kind: input, shape index: {}]   ;;  %s5700_s4 = inlined_call_operand.vmem [shape: bf16[128,512], index: 4, kind: input, shape index: {}]   ;;  %s5701_s5 = inlined_call_operand.vmem [shape: f32[1,512], index: 5, kind: input, shape index: {}]   ;;  %s5702_s6 = inlined_call_operand.vmem [shape: bf16[128,256], index: 6, kind: input, shape index: {}]   ;;  %s5703_s7 = inlined_call_operand.vmem [shape: f32[1,256], index: 7, kind: input, shape index: {}]   ;;  %s5704_s8 = inlined_call_operand.hbm [shape: f32[8,8,256], index: 8, kind: output, shape index: {0}]   ;;  %s5705_s9 = inlined_call_operand.hbm [shape: f32[8,128], index: 9, kind: output, shape index: {1}]   ;;  %s5706_s10 = inlined_call_operand.hbm [shape: f32[8,128], index: 10, kind: output, shape index: {2}]  }
   0x1   :  { %v4072_v0 = vld [vmem:[%s5699_s3 + $0xc] ss:$16 sps:$4 sm:$0xff]   ;;  %v4074_v1 = vld [vmem:[%s5699_s3 + $0x8] ss:$16 sps:$4 sm:$0xff]   ;;  %299 = vmatprep.mubr.bf16.mxu1 %v5710_v2  ;;  %226 = vmatprep.mubr.bf16.mxu0 %v5710_v2  ;;  %v4533_v9 = vld [vmem:[%s5700_s4 + $0x4] ss:$16 sps:$4 sm:$0xff]  }
   0x2   :  { %267 = vmatprep.subr.bf16.mxu1 %v4072_v0  ;;  %v4075_v3 = vld [vmem:[%s5699_s3 + $0x2c] ss:$16 sps:$4 sm:$0xff]   ;;  %v4077_v4 = vld [vmem:[%s5699_s3 + $0x28] ss:$16 sps:$4 sm:$0xff]   ;;  %v4098_v10 = vld [vmem:[%s5699_s3 + $0x4] ss:$16 sps:$4 sm:$0xff]  }
   0x3   :  { %268 = vmatpush1.bf16.msra.mxu1 %v4074_v1  ;;  %v4078_v5 = vld [vmem:[%s5699_s3 + $0x4c] ss:$16 sps:$4 sm:$0xff]   ;;  %v4080_v6 = vld [vmem:[%s5699_s3 + $0x48] ss:$16 sps:$4 sm:$0xff]   ;;  %v4100_v11 = vld [vmem:[%s5699_s3] ss:$16 sps:$4 sm:$0xff]   ;;  %194 = vmatprep.subr.bf16.mxu0 %v4098_v10 }
   0x4   :  { %269 = vmatprep.subr.bf16.mxu1 %v4075_v3  ;;  %v4081_v7 = vld [vmem:[%s5699_s3 + $0x6c] ss:$16 sps:$4 sm:$0xff]   ;;  %v4083_v8 = vld [vmem:[%s5699_s3 + $0x68] ss:$16 sps:$4 sm:$0xff]   ;;  %v4084_v12 = vld [vmem:[%s5696_s0] sm:$0xff]   ;;  %195 = vmatpush1.bf16.msra.mxu0 %v4100_v11 }
   0x5   :  { %v4547_v13 = vld [vmem:[%s5700_s4] ss:$16 sps:$4 sm:$0xff]   ;;  %v4553_v14 = vld [vmem:[%s5700_s4 + $0x24] ss:$16 sps:$4 sm:$0xff]   ;;  %v4091_v21 = vld [vmem:[%s5696_s0 + $0x8] sm:$0xff]  }
   0x6   :  { %v4105_v15 = vld [vmem:[%s5699_s3 + $0x24] ss:$16 sps:$4 sm:$0xff]   ;;  %v4107_v16 = vld [vmem:[%s5699_s3 + $0x20] ss:$16 sps:$4 sm:$0xff]   ;;  %v4114_v32 = vld [vmem:[%s5696_s0 + $0x18] sm:$0xff]  }
   0x7   :  { %270 = vmatpush1.bf16.msra.mxu1 %v4077_v4  ;;  %v4565_v17 = vld [vmem:[%s5700_s4 + $0x20] ss:$16 sps:$4 sm:$0xff]   ;;  %v4111_v18 = vld [vmem:[%s5699_s3 + $0x44] ss:$16 sps:$4 sm:$0xff]   ;;  %196 = vmatprep.subr.bf16.mxu0 %v4105_v15  ;;  %v4682_v38 = vld [vmem:[%s5700_s4 + $0xc] ss:$16 sps:$4 sm:$0xff]  }
   0x8   :  { %271 = vmatprep.subr.bf16.mxu1 %v4078_v5  ;;  %v4576_v19 = vld [vmem:[%s5700_s4 + $0x44] ss:$16 sps:$4 sm:$0xff]   ;;  %197 = vmatpush1.bf16.msra.mxu0 %v4107_v16  ;;  %v4113_v20 = vld [vmem:[%s5699_s3 + $0x40] ss:$16 sps:$4 sm:$0xff]   ;;  %v4691_v39 = vld [vmem:[%s5700_s4 + $0x8] ss:$16 sps:$4 sm:$0xff]  }
   0x9   :  { %198 = vmatprep.subr.bf16.mxu0 %v4111_v18  ;;  %v4588_v22 = vld [vmem:[%s5700_s4 + $0x40] ss:$16 sps:$4 sm:$0xff]   ;;  %v4118_v23 = vld [vmem:[%s5699_s3 + $0x64] ss:$16 sps:$4 sm:$0xff]   ;;  %v4697_v41 = vld [vmem:[%s5700_s4 + $0x2c] ss:$16 sps:$4 sm:$0xff]  }
   0xa   :  { %v4597_v24 = vld [vmem:[%s5700_s4 + $0x64] ss:$16 sps:$4 sm:$0xff]   ;;  %v4120_v25 = vld [vmem:[%s5699_s3 + $0x60] ss:$16 sps:$4 sm:$0xff]   ;;  %v4706_v42 = vld [vmem:[%s5700_s4 + $0x28] ss:$16 sps:$4 sm:$0xff]  }
   0xb   :  { %272 = vmatpush1.bf16.msra.mxu1 %v4080_v6  ;;  %v4607_v26 = vld [vmem:[%s5700_s4 + $0x60] ss:$16 sps:$4 sm:$0xff]   ;;  %v4614_v27 = vld [vmem:[%s5700_s4 + $0x84] ss:$16 sps:$4 sm:$0xff]   ;;  %v4713_v43 = vld [vmem:[%s5700_s4 + $0x4c] ss:$16 sps:$4 sm:$0xff]  }
   0xc   :  { %273 = vmatprep.subr.bf16.mxu1 %v4081_v7  ;;  %199 = vmatpush1.bf16.msra.mxu0 %v4113_v20  ;;  %v4101_v28 = vld [vmem:[%s5696_s0 + $0x10] sm:$0xff]   ;;  %v372_v37 = vld [vmem:[%s5697_s1] sm:$0xff]  ;;  %v4722_v44 = vld [vmem:[%s5700_s4 + $0x48] ss:$16 sps:$4 sm:$0xff]  }
   0xd   :  { %200 = vmatprep.subr.bf16.mxu0 %v4118_v23  ;;  %v4624_v29 = vld [vmem:[%s5700_s4 + $0x80] ss:$16 sps:$4 sm:$0xff]   ;;  %v4630_v30 = vld [vmem:[%s5700_s4 + $0xa4] ss:$16 sps:$4 sm:$0xff]   ;;  %v381_v40 = vpack.c.bf16 %v372_v37, %v372_v37  ;;  %v4728_v45 = vld [vmem:[%s5700_s4 + $0x6c] ss:$16 sps:$4 sm:$0xff]  }
   0xe   :  { %v4641_v31 = vld [vmem:[%s5700_s4 + $0xa0] ss:$16 sps:$4 sm:$0xff]   ;;  %v4651_v33 = vld [vmem:[%s5700_s4 + $0xc4] ss:$16 sps:$4 sm:$0xff]  }
   0xf   :  { %274 = vmatpush1.bf16.msra.mxu1 %v4083_v8  ;;  %v4656_v34 = vld [vmem:[%s5700_s4 + $0xc0] ss:$16 sps:$4 sm:$0xff]   ;;  %v4662_v35 = vld [vmem:[%s5700_s4 + $0xe4] ss:$16 sps:$4 sm:$0xff]  }
  0x10   :  { %574 = vmatprep.subr.bf16.mxu1 %v4533_v9  ;;  %201 = vmatpush1.bf16.msra.mxu0 %v4120_v25  ;;  %v4671_v36 = vld [vmem:[%s5700_s4 + $0xe0] ss:$16 sps:$4 sm:$0xff]  }
  0x11   :  { %882 = vmatprep.subr.bf16.mxu0 %v4533_v9 }
  0x12   :  { %3789 = vmatmul.mubr.msk.bf16.vlgmr.msra.gmra.mrb[0].mxu1 %vm181_vm0, %v4084_v12 }
  0x13   :  { %575 = vmatpush1.bf16.msra.mxu1 %v4547_v13  ;;  %309 = vmatprep.mubr.bf16.mxu1 %v5710_v2 }
  0x14   :  { %576 = vmatprep.subr.bf16.mxu1 %v4553_v14  ;;  %3785 = vmatmul.mubr.msk.bf16.vlgmr.msra.gmra.mrb[0].mxu0 %vm181_vm0, %v4084_v12 }
  0x15   :  { %883 = vmatpush1.bf16.msra.mxu0 %v4547_v13  ;;  %236 = vmatprep.mubr.bf16.mxu0 %v5710_v2 }
  0x16   :  { %884 = vmatprep.subr.bf16.mxu0 %v4553_v14 }
  0x17   :  { %577 = vmatpush1.bf16.msra.mxu1 %v4565_v17 }
  0x18   :  { %578 = vmatprep.subr.bf16.mxu1 %v4576_v19 }
  0x19   :  { %885 = vmatpush1.bf16.msra.mxu0 %v4565_v17 }
  0x1a   :  { %3790 = vmatmul.mubr.msk.bf16.gmra.mrb[4].mxu1 %vm181_vm0, %v4091_v21  ;;  %886 = vmatprep.subr.bf16.mxu0 %v4576_v19 }
  0x1b   :  { %579 = vmatpush1.bf16.msra.mxu1 %v4588_v22  ;;  %319 = vmatprep.mubr.bf16.mxu1 %v5710_v2 }
  0x1c   :  { %580 = vmatprep.subr.bf16.mxu1 %v4597_v24  ;;  %3786 = vmatmul.mubr.msk.bf16.gmra.mrb[4].mxu0 %vm181_vm0, %v4091_v21 }
  0x1d   :  { %887 = vmatpush1.bf16.msra.mxu0 %v4588_v22  ;;  %246 = vmatprep.mubr.bf16.mxu0 %v5710_v2 }
  0x1e   :  { %888 = vmatprep.subr.bf16.mxu0 %v4597_v24 }
  0x1f   :  { %581 = vmatpush1.bf16.msra.mxu1 %v4607_v26 }
  0x20   :  { %582 = vmatprep.subr.bf16.mxu1 %v4614_v27 }
  0x21   :  { %889 = vmatpush1.bf16.msra.mxu0 %v4607_v26 }
  0x22   :  { %3791 = vmatmul.mubr.msk.bf16.gmra.mrb[8].mxu1 %vm181_vm0, %v4101_v28  ;;  %890 = vmatprep.subr.bf16.mxu0 %v4614_v27 }
  0x23   :  { %583 = vmatpush1.bf16.msra.mxu1 %v4624_v29  ;;  %329 = vmatprep.mubr.bf16.mxu1 %v5710_v2 }
  0x24   :  { %584 = vmatprep.subr.bf16.mxu1 %v4630_v30  ;;  %3787 = vmatmul.mubr.msk.bf16.gmra.mrb[8].mxu0 %vm181_vm0, %v4101_v28 }
  0x25   :  { %891 = vmatpush1.bf16.msra.mxu0 %v4624_v29  ;;  %256 = vmatprep.mubr.bf16.mxu0 %v5710_v2 }
  0x26   :  { %892 = vmatprep.subr.bf16.mxu0 %v4630_v30 }
  0x27   :  { %585 = vmatpush1.bf16.msra.mxu1 %v4641_v31 }
  0x28   :  { %586 = vmatprep.subr.bf16.mxu1 %v4651_v33 }
  0x29   :  { %893 = vmatpush1.bf16.msra.mxu0 %v4641_v31 }
  0x2a   :  { %3792 = vmatmul.mubr.msk.bf16.gmra.mrb[12].mxu1 %vm181_vm0, %v4114_v32  ;;  %894 = vmatprep.subr.bf16.mxu0 %v4651_v33 }
  0x2b   :  { %587 = vmatpush1.bf16.msra.mxu1 %v4656_v34  ;;  %606 = vmatprep.mubr.bf16.mxu1 %v5710_v2 }
  0x2c   :  { %588 = vmatprep.subr.bf16.mxu1 %v4662_v35  ;;  %3788 = vmatmul.mubr.msk.bf16.gmra.mrb[12].mxu0 %vm181_vm0, %v4114_v32 }
  0x2d   :  { %895 = vmatpush1.bf16.msra.mxu0 %v4656_v34  ;;  %914 = vmatprep.mubr.bf16.mxu0 %v5710_v2 }
  0x2e   :  { %896 = vmatprep.subr.bf16.mxu0 %v4662_v35 }
  0x2f   :  { %589 = vmatpush1.bf16.msra.mxu1 %v4671_v36 }
  0x30   :  { %615 = vmatprep.subr.bf16.mxu1 %v4682_v38 }
  0x32   :  { %607 = vmatmul.mubr.bf16.vlgmr.msra.gmra.mrb[16].mxu1 %v381_v40 }
  0x33   :  { %616 = vmatpush1.bf16.msra.mxu1 %v4691_v39  ;;  %647 = vmatprep.mubr.bf16.mxu1 %v5710_v2 }
  0x34   :  { %617 = vmatprep.subr.bf16.mxu1 %v4697_v41 }
  0x37   :  { %618 = vmatpush1.bf16.msra.mxu1 %v4706_v42 }
  0x38   :  { %619 = vmatprep.subr.bf16.mxu1 %v4713_v43 }
  0x39   :  { %17 = vsyncpa [#allocation7], 0  ;;  %v4741_v46 = vld [vmem:[%s5700_s4 + $0x68] ss:$16 sps:$4 sm:$0xff]   ;;  %v4747_v47 = vld [vmem:[%s5700_s4 + $0x8c] ss:$16 sps:$4 sm:$0xff]   ;;  %897 = vmatpush1.bf16.msra.mxu0 %v4671_v36  ;;  %v5707_v55 = vlaneseq }
  0x3a   :  { %1191 = vmatprep.subr.bf16.mxu0 %v4533_v9  ;;  %v4755_v48 = vld [vmem:[%s5700_s4 + $0x88] ss:$16 sps:$4 sm:$0xff]   ;;  %v4761_v49 = vld [vmem:[%s5700_s4 + $0xac] ss:$16 sps:$4 sm:$0xff]   ;;  %v59_v58 = vld [vmem:[%s5701_s5] sm:$0xf] }
  0x3b   :  { %620 = vmatpush1.bf16.msra.mxu1 %v4722_v44  ;;  %v4767_v50 = vld [vmem:[%s5700_s4 + $0xa8] ss:$16 sps:$4 sm:$0xff]   ;;  %v4773_v51 = vld [vmem:[%s5700_s4 + $0xcc] ss:$16 sps:$4 sm:$0xff]   ;;  %v4814_v56 = vshrl.u32 %v5707_v55, 7 }
  0x3c   :  { %621 = vmatprep.subr.bf16.mxu1 %v4728_v45  ;;  %v4779_v52 = vld [vmem:[%s5700_s4 + $0xc8] ss:$16 sps:$4 sm:$0xff]   ;;  %v4785_v53 = vld [vmem:[%s5700_s4 + $0xec] ss:$16 sps:$4 sm:$0xff]  }
  0x3d   :  { %v4791_v54 = vld [vmem:[%s5700_s4 + $0xe8] ss:$16 sps:$4 sm:$0xff]   ;;  %5714 = vst [vmem:[#allocation11_spill] sm:$0xff] %v4814_v56  ;;  %v71_v57 = vsub.s32 2, %v4814_v56  ;;  %v75_v59 = vsub.s32 3, %v4814_v56  ;;  %v5709_v12 = vsub.s32 0, %v4814_v56 }
  0x3e   :  { %v5708_v16 = vsub.s32 1, %v4814_v56 }
  0x3f   :  { %622 = vmatpush1.bf16.msra.mxu1 %v4741_v46  ;;  %v4821_v60 = vrot.slane %v59_v58, %v71_v57  ;;  %v4827_v63 = vrot.slane %v59_v58, %v75_v59  ;;  %v64_v20 = vrot.slane %v59_v58, %v5709_v12 }
  0x40   :  { %623 = vmatprep.subr.bf16.mxu1 %v4747_v47  ;;  %v68_v25 = vrot.slane %v59_v58, %v5708_v16 }
  0x43   :  { %624 = vmatpush1.bf16.msra.mxu1 %v4755_v48 }
  0x44   :  { %625 = vmatprep.subr.bf16.mxu1 %v4761_v49 }
  0x47   :  { %626 = vmatpush1.bf16.msra.mxu1 %v4767_v50 }
  0x48   :  { %627 = vmatprep.subr.bf16.mxu1 %v4773_v51 }
  0x4b   :  { %628 = vmatpush1.bf16.msra.mxu1 %v4779_v52 }
  0x4c   :  { %629 = vmatprep.subr.bf16.mxu1 %v4785_v53 }
  0x4f   :  { %630 = vmatpush1.bf16.msra.mxu1 %v4791_v54 }
  0x50   :  { %923 = vmatprep.subr.bf16.mxu1 %v4682_v38 }
  0x52   :  { %648 = vmatmul.mubr.bf16.vlgmr.msra.gmra.mrb[20].mxu1 %v381_v40 }
  0x53   :  { %924 = vmatpush1.bf16.msra.mxu1 %v4691_v39  ;;  %955 = vmatprep.mubr.bf16.mxu1 %v5710_v2 }
  0x54   :  { %925 = vmatprep.subr.bf16.mxu1 %v4697_v41 }
  0x57   :  { %926 = vmatpush1.bf16.msra.mxu1 %v4706_v42 }
  0x58   :  { %927 = vmatprep.subr.bf16.mxu1 %v4713_v43 }
  0x5b   :  { %928 = vmatpush1.bf16.msra.mxu1 %v4722_v44 }
  0x5c   :  { %929 = vmatprep.subr.bf16.mxu1 %v4728_v45 }
  0x5f   :  { %930 = vmatpush1.bf16.msra.mxu1 %v4741_v46 }
  0x60   :  { %931 = vmatprep.subr.bf16.mxu1 %v4747_v47 }
  0x63   :  { %932 = vmatpush1.bf16.msra.mxu1 %v4755_v48 }
  0x64   :  { %933 = vmatprep.subr.bf16.mxu1 %v4761_v49 }
  0x67   :  { %934 = vmatpush1.bf16.msra.mxu1 %v4767_v50 }
  0x68   :  { %935 = vmatprep.subr.bf16.mxu1 %v4773_v51 }
  0x6b   :  { %936 = vmatpush1.bf16.msra.mxu1 %v4779_v52 }
  0x6c   :  { %937 = vmatprep.subr.bf16.mxu1 %v4785_v53 }
  0x6f   :  { %938 = vmatpush1.bf16.msra.mxu1 %v4791_v54 }
  0x70   :  { %1232 = vmatprep.subr.bf16.mxu1 %v4682_v38 }
  0xe5   :  { %v4823_v61 = vpop.f32.mrb[0].mxu1 }
  0xe6   :  { %v4825_v62 = vpop.f32.mrb[1].mxu1 }
  0xe7   :  { %v305_v0 = vpop.f32.mrb[2].mxu1  ;;  %v228_v18 = vpop.f32.mrb[0].mxu0 }
  0xe8   :  { %v4830_v1 = vadd.f32 %v305_v0, %v4821_v60  ;;  %v307_v3 = vpop.f32.mrb[3].mxu1  ;;  %v230_v21 = vpop.f32.mrb[1].mxu0 }
  0xe9   :  { %v4833_v4 = vadd.f32 %v307_v3, %v4827_v63  ;;  %v232_v28 = vpop.f32.mrb[2].mxu0 }
  0xea   :  { %v4856_v40 = vadd.f32 %v232_v28, %v64_v20  ;;  %v234_v57 = vpop.f32.mrb[3].mxu0 }
  0xeb   :  { %v4861_v3 = vadd.f32 %v234_v57, %v68_v25 }
  0xed   :  { %v311_v5 = vpop.f32.mrb[4].mxu1 }
  0xee   :  { %v4836_v6 = vadd.f32 %v311_v5, %v4821_v60  ;;  %v313_v7 = vpop.f32.mrb[5].mxu1 }
  0xef   :  { %v4839_v8 = vadd.f32 %v313_v7, %v4827_v63  ;;  %v315_v9 = vpop.f32.mrb[6].mxu1 }
  0xf0   :  { %v4842_v10 = vadd.f32 %v315_v9, %v4821_v60  ;;  %v317_v11 = vpop.f32.mrb[7].mxu1  ;;  %v238_v9 = vpop.f32.mrb[4].mxu0 }
  0xf1   :  { %5715 = vst [vmem:[#allocation12_spill] sm:$0xff] %v4839_v8  ;;  %v4846_v15 = vadd.f32 %v317_v11, %v4827_v63  ;;  %v4869_v11 = vadd.f32 %v238_v9, %v64_v20 }
  0xf2   :  { %5716 = vst [vmem:[#allocation13_spill] sm:$0xff] %v4842_v10 }
  0xf3   :  { %5717 = vst [vmem:[#allocation14_spill] sm:$0xff] %v4846_v15 }
  0xf5   :  { %v321_v23 = vpop.f32.mrb[8].mxu1 }
  0xf6   :  { %v4854_v32 = vadd.f32 %v321_v23, %v4821_v60  ;;  %v323_v37 = vpop.f32.mrb[9].mxu1  ;;  %v240_v23 = vpop.f32.mrb[5].mxu0 }
  0xf7   :  { %v4859_v59 = vadd.f32 %v323_v37, %v4827_v63  ;;  %v325_v0 = vpop.f32.mrb[10].mxu1  ;;  %v4871_v55 = vadd.f32 %v240_v23, %v68_v25  ;;  %v242_v16 = vpop.f32.mrb[6].mxu0 }
  0xf8   :  { %5718 = vst [vmem:[#allocation15_spill] sm:$0xff] %v4854_v32  ;;  %v4864_v5 = vadd.f32 %v325_v0, %v4821_v60  ;;  %v327_v7 = vpop.f32.mrb[11].mxu1  ;;  %v4876_v12 = vadd.f32 %v242_v16, %v64_v20  ;;  %v244_v0 = vpop.f32.mrb[7].mxu0 }
  0xf9   :  { %5719 = vst [vmem:[#allocation16_spill] sm:$0xff] %v4859_v59  ;;  %v4867_v58 = vadd.f32 %v327_v7, %v4827_v63  ;;  %v4881_v56 = vadd.f32 %v244_v0, %v68_v25 }
  0xfa   :  { %5720 = vst [vmem:[#allocation17_spill] sm:$0xff] %v4864_v5  ;;  %5723 = vst [vmem:[#allocation20_spill] sm:$0xff] %v4876_v12  ;;  %v229_v5 = vadd.f32 %v228_v18, %v64_v20 }
  0xfb   :  { %5721 = vst [vmem:[#allocation18_spill] sm:$0xff] %v4867_v58  ;;  %5725 = vst [vmem:[#allocation22_spill] sm:$0xff] %v4881_v56 }
  0xfd   :  { %v331_v28 = vpop.f32.mrb[12].mxu1 }
  0xfe   :  { %v4874_v37 = vadd.f32 %v331_v28, %v4821_v60  ;;  %v333_v57 = vpop.f32.mrb[13].mxu1  ;;  %v231_v28 = vadd.f32 %v230_v21, %v68_v25 }
  0xff   :  { %v4879_v2 = vadd.f32 %v333_v57, %v4827_v63  ;;  %v335_v7 = vpop.f32.mrb[14].mxu1 }
 0x100   :  { %5722 = vst [vmem:[#allocation19_spill] sm:$0xff] %v4874_v37  ;;  %v4884_v9 = vadd.f32 %v335_v7, %v4821_v60  ;;  %v337_v58 = vpop.f32.mrb[15].mxu1  ;;  %v248_v37 = vpop.f32.mrb[8].mxu0 }
 0x101   :  { %5724 = vst [vmem:[#allocation21_spill] sm:$0xff] %v4879_v2  ;;  %v4887_v23 = vadd.f32 %v337_v58, %v4827_v63  ;;  %v4889_v59 = vadd.f32 %v248_v37, %v64_v20  ;;  %v250_v16 = vpop.f32.mrb[9].mxu0 }
 0x102   :  { %5726 = vst [vmem:[#allocation23_spill] sm:$0xff] %v4884_v9  ;;  %v4891_v15 = vadd.f32 %v250_v16, %v68_v25  ;;  %v252_v57 = vpop.f32.mrb[10].mxu0 }
 0x103   :  { %5727 = vst [vmem:[#allocation24_spill] sm:$0xff] %v4887_v23  ;;  %5728 = vst [vmem:[#allocation25_spill] sm:$0xff] %v4889_v59  ;;  %v4893_v56 = vadd.f32 %v252_v57, %v64_v20  ;;  %v254_v7 = vpop.f32.mrb[11].mxu0 }
 0x104   :  { %5729 = vst [vmem:[#allocation26_spill] sm:$0xff] %v4891_v15  ;;  %v4895_v12 = vadd.f32 %v254_v7, %v68_v25  ;;  %v258_v18 = vpop.f32.mrb[12].mxu0 }
 0x105   :  { %v608_v32 = vpop.f32.mrb[16].mxu1  ;;  %v4897_v21 = vadd.f32 %v258_v18, %v64_v20  ;;  %v260_v37 = vpop.f32.mrb[13].mxu0  ;;  %v304_v18 = vadd.f32 %v4825_v62, %v4827_v63 }
 0x106   :  { %v656_v2 = vadd.f32 %v608_v32, %v229_v5  ;;  %v610_v0 = vpop.f32.mrb[17].mxu1  ;;  %v4899_v59 = vadd.f32 %v260_v37, %v68_v25  ;;  %v262_v16 = vpop.f32.mrb[14].mxu0 }
 0x107   :  { %v657_v9 = vadd.f32 %v610_v0, %v231_v28  ;;  %v612_v10 = vpop.f32.mrb[18].mxu1  ;;  %v4901_v8 = vadd.f32 %v262_v16, %v64_v20  ;;  %v264_v32 = vpop.f32.mrb[15].mxu0 }
 0x108   :  { %v613_v58 = vpop.f32.mrb[19].mxu1  ;;  %v660_v15 = vsub.f32 0.0, %v656_v2  ;;  %v4903_v5 = vadd.f32 %v264_v32, %v68_v25 }
 0x109   :  { %v665_v23 = vsub.f32 0.0, %v657_v9  ;;  %v302_v9 = vadd.f32 %v4823_v61, %v4821_v60  ;;  %v373_v60 = vld [vmem:[%s5698_s2] sm:$0xff] }
 0x10a   :  { %v661_v28 = vmul.f32 1.442695, %v660_v15 }
 0x10b   :  { %v666_v57 = vmul.f32 1.442695, %v665_v23 }
 0x10d   :  { %4244 = vpow2.f32 %v666_v57 }
 0x10e   :  { %4246 = vpow2.f32 %v661_v28 }
 0x117   :  { %v4245_v10 = vpop.eup %4244 }
 0x118   :  { %v4247_v0 = vpop.eup %4246  ;;  %v668_v7 = vadd.f32 1.0, %v4245_v10 }
 0x119   :  { %v663_v58 = vadd.f32 1.0, %v4247_v0 }
 0x11a   :  { %4248 = vrcp.f32 %v668_v7 }
 0x11b   :  { %4250 = vrcp.f32 %v663_v58 }
 0x124   :  { %v4249_v57 = vpop.eup %4248 }
 0x125   :  { %v649_v2 = vpop.f32.mrb[20].mxu1  ;;  %v4251_v61 = vpop.eup %4250  ;;  %v676_v62 = vmul.f32 %v4249_v57, %v373_v60 }
 0x126   :  { %v658_v20 = vadd.f32 %v649_v2, %v302_v9  ;;  %v651_v37 = vpop.f32.mrb[21].mxu1 }
 0x127   :  { %v659_v25 = vadd.f32 %v651_v37, %v304_v18  ;;  %v653_v23 = vpop.f32.mrb[22].mxu1 }
 0x128   :  { %4252 = vtanh.f32 %v658_v20  ;;  %v654_v15 = vpop.f32.mrb[23].mxu1  ;;  %v5730_v20 = vmov 0  }
 0x129   :  { %v671_v16 = vsub.f32 0.0, %v659_v25 }
 0x12b   :  { %v672_v32 = vmul.f32 1.442695, %v671_v16 }
 0x12d   :  { %4254 = vpow2.f32 %v672_v32 }
 0x132   :  { %v4253_v28 = vpop.eup %4252 }
 0x133   :  { %v677_v63 = vmul.f32 %v4253_v28, %v4251_v61 }
 0x135   :  { %v4912_v10 = vadd.f32 %v677_v63, %v676_v62 }
 0x137   :  { %v4255_v0 = vpop.eup %4254  ;;  %4256 = vtanh.f32 %v4912_v10 }
 0x138   :  { %v674_v7 = vadd.f32 1.0, %v4255_v0 }
 0x13a   :  { %4258 = vrcp.f32 %v674_v7 }
 0x141   :  { %v4257_v58 = vpop.eup %4256 }
 0x144   :  { %v4259_v9 = vpop.eup %4258 }
 0x145   :  { %v4915_v18 = vmul.f32 %v4259_v9, %v4257_v58 }
 0x147   :  { %v689_v2 = vpack.c.bf16 %v4915_v18, %v4915_v18 }
 0x149   :  { %915 = vmatmul.mubr.bf16.vlgmr.msra.gmra.mrb[16].mxu0 %v689_v2  ;;  %956 = vmatmul.mubr.bf16.vlgmr.msra.gmra.mrb[24].mxu1 %v689_v2 }
 0x14a   :  { %1192 = vmatpush1.bf16.msra.mxu0 %v4547_v13  ;;  %1233 = vmatpush1.bf16.msra.mxu1 %v4691_v39 }
 0x14b   :  { %1193 = vmatprep.subr.bf16.mxu0 %v4553_v14  ;;  %1234 = vmatprep.subr.bf16.mxu1 %v4697_v41 }
 0x14c   :  { %1223 = vmatprep.mubr.bf16.mxu0 %v5730_v20  ;;  %1264 = vmatprep.mubr.bf16.mxu1 %v5730_v20 }
 0x14e   :  { %1194 = vmatpush1.bf16.msra.mxu0 %v4565_v17  ;;  %1235 = vmatpush1.bf16.msra.mxu1 %v4706_v42 }
 0x14f   :  { %1195 = vmatprep.subr.bf16.mxu0 %v4576_v19  ;;  %1236 = vmatprep.subr.bf16.mxu1 %v4713_v43 }
 0x152   :  { %1196 = vmatpush1.bf16.msra.mxu0 %v4588_v22  ;;  %1237 = vmatpush1.bf16.msra.mxu1 %v4722_v44 }
 0x153   :  { %1197 = vmatprep.subr.bf16.mxu0 %v4597_v24  ;;  %1238 = vmatprep.subr.bf16.mxu1 %v4728_v45 }
 0x156   :  { %1198 = vmatpush1.bf16.msra.mxu0 %v4607_v26  ;;  %1239 = vmatpush1.bf16.msra.mxu1 %v4741_v46 }
 0x157   :  { %1199 = vmatprep.subr.bf16.mxu0 %v4614_v27  ;;  %1240 = vmatprep.subr.bf16.mxu1 %v4747_v47 }
 0x15a   :  { %1200 = vmatpush1.bf16.msra.mxu0 %v4624_v29  ;;  %1241 = vmatpush1.bf16.msra.mxu1 %v4755_v48 }
 0x15b   :  { %1201 = vmatprep.subr.bf16.mxu0 %v4630_v30  ;;  %1242 = vmatprep.subr.bf16.mxu1 %v4761_v49 }
 0x15e   :  { %1202 = vmatpush1.bf16.msra.mxu0 %v4641_v31  ;;  %1243 = vmatpush1.bf16.msra.mxu1 %v4767_v50 }
 0x15f   :  { %1203 = vmatprep.subr.bf16.mxu0 %v4651_v33  ;;  %1244 = vmatprep.subr.bf16.mxu1 %v4773_v51 }
 0x162   :  { %1204 = vmatpush1.bf16.msra.mxu0 %v4656_v34  ;;  %1245 = vmatpush1.bf16.msra.mxu1 %v4779_v52 }
 0x163   :  { %1205 = vmatprep.subr.bf16.mxu0 %v4662_v35  ;;  %1246 = vmatprep.subr.bf16.mxu1 %v4785_v53 }
 0x166   :  { %1206 = vmatpush1.bf16.msra.mxu0 %v4671_v36  ;;  %1247 = vmatpush1.bf16.msra.mxu1 %v4791_v54 }
 0x167   :  { %1541 = vmatprep.subr.bf16.mxu1 %v4682_v38 }
 0x21c   :  { %v916_v13 = vpop.f32.mrb[16].mxu0  ;;  %v957_v14 = vpop.f32.mrb[24].mxu1 }
 0x21d   :  { %v964_v17 = vadd.f32 %v916_v13, %v4856_v40  ;;  %v966_v19 = vadd.f32 %v957_v14, %v4830_v1  ;;  %v918_v22 = vpop.f32.mrb[17].mxu0  ;;  %v959_v24 = vpop.f32.mrb[25].mxu1 }
 0x21e   :  { %v965_v26 = vadd.f32 %v918_v22, %v4861_v3  ;;  %v967_v27 = vadd.f32 %v959_v24, %v4833_v4  ;;  %v920_v29 = vpop.f32.mrb[18].mxu0  ;;  %v961_v30 = vpop.f32.mrb[26].mxu1  ;;  %v5731_v22 = vld [vmem:[#allocation12_spill] sm:$0xff] }
 0x21f   :  { %v968_v31 = vsub.f32 0.0, %v964_v17  ;;  %v921_v33 = vpop.f32.mrb[19].mxu0  ;;  %v962_v34 = vpop.f32.mrb[27].mxu1 }
 0x220   :  { %v973_v35 = vsub.f32 0.0, %v965_v26  ;;  %v979_v37 = vsub.f32 0.0, %v967_v27 }
 0x221   :  { %v969_v36 = vmul.f32 1.442695, %v968_v31 }
 0x222   :  { %v974_v38 = vmul.f32 1.442695, %v973_v35  ;;  %v980_v40 = vmul.f32 1.442695, %v979_v37 }
 0x223   :  { %4260 = vpow2.f32 %v969_v36 }
 0x224   :  { %4262 = vpow2.f32 %v974_v38 }
 0x225   :  { %4264 = vpow2.f32 %v980_v40 }
 0x226   :  { %4266 = vtanh.f32 %v966_v19 }
 0x22d   :  { %v4261_v25 = vpop.eup %4260 }
 0x22e   :  { %v4263_v1 = vpop.eup %4262  ;;  %v971_v23 = vadd.f32 1.0, %v4261_v25 }
 0x22f   :  { %v976_v3 = vadd.f32 1.0, %v4263_v1  ;;  %v4265_v4 = vpop.eup %4264 }
 0x230   :  { %4268 = vrcp.f32 %v971_v23  ;;  %v4267_v15 = vpop.eup %4266  ;;  %v982_v60 = vadd.f32 1.0, %v4265_v4 }
 0x231   :  { %4270 = vrcp.f32 %v976_v3 }
 0x232   :  { %4272 = vrcp.f32 %v982_v60 }
 0x23a   :  { %v4269_v16 = vpop.eup %4268 }
 0x23b   :  { %v4271_v32 = vpop.eup %4270  ;;  %v985_v57 = vmul.f32 %v4269_v16, %v4267_v15 }
 0x23c   :  { %v984_v61 = vmul.f32 %v4271_v32, %v4912_v10  ;;  %v4273_v62 = vpop.eup %4272  ;;  %v5073_v10 = vld [vmem:[%s5700_s4 + $0xe0] ss:$16 sps:$4 sm:$0xff]  }
 0x23e   :  { %v4957_v28 = vadd.f32 %v985_v57, %v984_v61 }
 0x240   :  { %4274 = vtanh.f32 %v4957_v28 }
 0x24a   :  { %v4275_v63 = vpop.eup %4274 }
 0x24b   :  { %v4960_v0 = vmul.f32 %v4275_v63, %v4273_v62  ;;  %v5116_v62 = vld [vmem:[%s5700_s4 + $0x8] ss:$16 sps:$4 sm:$0xff]   ;;  %v5123_v63 = vld [vmem:[%s5700_s4 + $0x2c] ss:$16 sps:$4 sm:$0xff]  }
 0x24d   :  { %v998_v7 = vpack.c.bf16 %v4960_v0, %v4960_v0 }
 0x24f   :  { %1224 = vmatmul.mubr.bf16.vlgmr.msra.gmra.mrb[20].mxu0 %v998_v7  ;;  %1265 = vmatmul.mubr.bf16.vlgmr.msra.gmra.mrb[28].mxu1 %v998_v7  ;;  %v5128_v7 = vld [vmem:[%s5700_s4 + $0x28] ss:$16 sps:$4 sm:$0xff]  }
 0x250   :  { %1542 = vmatpush1.bf16.msra.mxu1 %v4691_v39  ;;  %1532 = vmatprep.mubr.bf16.mxu0 %v5730_v20  ;;  %v4984_v39 = vld [vmem:[%s5700_s4 + $0x4] ss:$16 sps:$4 sm:$0xff]  }
 0x251   :  { %1543 = vmatprep.subr.bf16.mxu1 %v4697_v41  ;;  %1573 = vmatprep.mubr.bf16.mxu1 %v5730_v20  ;;  %v4989_v41 = vld [vmem:[%s5700_s4] ss:$16 sps:$4 sm:$0xff]  }
 0x252   :  { %1500 = vmatprep.subr.bf16.mxu0 %v4984_v39 }
 0x253   :  { %1501 = vmatpush1.bf16.msra.mxu0 %v4989_v41 }
 0x254   :  { %1544 = vmatpush1.bf16.msra.mxu1 %v4706_v42  ;;  %v4996_v42 = vld [vmem:[%s5700_s4 + $0x24] ss:$16 sps:$4 sm:$0xff]  }
 0x255   :  { %1545 = vmatprep.subr.bf16.mxu1 %v4713_v43  ;;  %v5001_v43 = vld [vmem:[%s5700_s4 + $0x20] ss:$16 sps:$4 sm:$0xff]   ;;  %1502 = vmatprep.subr.bf16.mxu0 %v4996_v42 }
 0x257   :  { %1503 = vmatpush1.bf16.msra.mxu0 %v5001_v43 }
 0x258   :  { %1546 = vmatpush1.bf16.msra.mxu1 %v4722_v44  ;;  %v5008_v44 = vld [vmem:[%s5700_s4 + $0x44] ss:$16 sps:$4 sm:$0xff]  }
 0x259   :  { %1547 = vmatprep.subr.bf16.mxu1 %v4728_v45  ;;  %v5013_v45 = vld [vmem:[%s5700_s4 + $0x40] ss:$16 sps:$4 sm:$0xff]   ;;  %1504 = vmatprep.subr.bf16.mxu0 %v5008_v44 }
 0x25b   :  { %1505 = vmatpush1.bf16.msra.mxu0 %v5013_v45 }
 0x25c   :  { %1548 = vmatpush1.bf16.msra.mxu1 %v4741_v46  ;;  %v5020_v46 = vld [vmem:[%s5700_s4 + $0x64] ss:$16 sps:$4 sm:$0xff]  }
 0x25d   :  { %1549 = vmatprep.subr.bf16.mxu1 %v4747_v47  ;;  %v5025_v47 = vld [vmem:[%s5700_s4 + $0x60] ss:$16 sps:$4 sm:$0xff]   ;;  %1506 = vmatprep.subr.bf16.mxu0 %v5020_v46 }
 0x25f   :  { %1507 = vmatpush1.bf16.msra.mxu0 %v5025_v47 }
 0x260   :  { %1550 = vmatpush1.bf16.msra.mxu1 %v4755_v48  ;;  %v5032_v48 = vld [vmem:[%s5700_s4 + $0x84] ss:$16 sps:$4 sm:$0xff]  }
 0x261   :  { %1551 = vmatprep.subr.bf16.mxu1 %v4761_v49  ;;  %v5037_v49 = vld [vmem:[%s5700_s4 + $0x80] ss:$16 sps:$4 sm:$0xff]   ;;  %1508 = vmatprep.subr.bf16.mxu0 %v5032_v48 }
 0x263   :  { %1509 = vmatpush1.bf16.msra.mxu0 %v5037_v49 }
 0x264   :  { %1552 = vmatpush1.bf16.msra.mxu1 %v4767_v50  ;;  %v5043_v50 = vld [vmem:[%s5700_s4 + $0xa4] ss:$16 sps:$4 sm:$0xff]  }
 0x265   :  { %1553 = vmatprep.subr.bf16.mxu1 %v4773_v51  ;;  %v5049_v51 = vld [vmem:[%s5700_s4 + $0xa0] ss:$16 sps:$4 sm:$0xff]   ;;  %1510 = vmatprep.subr.bf16.mxu0 %v5043_v50 }
 0x267   :  { %1511 = vmatpush1.bf16.msra.mxu0 %v5049_v51 }
 0x268   :  { %1554 = vmatpush1.bf16.msra.mxu1 %v4779_v52  ;;  %v5055_v52 = vld [vmem:[%s5700_s4 + $0xc4] ss:$16 sps:$4 sm:$0xff]  }
 0x269   :  { %1555 = vmatprep.subr.bf16.mxu1 %v4785_v53  ;;  %v5061_v53 = vld [vmem:[%s5700_s4 + $0xc0] ss:$16 sps:$4 sm:$0xff]   ;;  %1512 = vmatprep.subr.bf16.mxu0 %v5055_v52 }
 0x26b   :  { %1513 = vmatpush1.bf16.msra.mxu0 %v5061_v53 }
 0x26c   :  { %1556 = vmatpush1.bf16.msra.mxu1 %v4791_v54  ;;  %v5067_v54 = vld [vmem:[%s5700_s4 + $0xe4] ss:$16 sps:$4 sm:$0xff]  }
 0x26d   :  { %1514 = vmatprep.subr.bf16.mxu0 %v5067_v54 }
 0x26f   :  { %1515 = vmatpush1.bf16.msra.mxu0 %v5073_v10 }
 0x270   :  { %1809 = vmatprep.subr.bf16.mxu0 %v4984_v39 }
 0x322   :  { %v1225_v58 = vpop.f32.mrb[20].mxu0  ;;  %v1266_v9 = vpop.f32.mrb[28].mxu1 }
 0x323   :  { %v1273_v2 = vadd.f32 %v1225_v58, %v4869_v11  ;;  %v1275_v13 = vadd.f32 %v1266_v9, %v4836_v6  ;;  %v1227_v14 = vpop.f32.mrb[21].mxu0  ;;  %v1268_v17 = vpop.f32.mrb[29].mxu1  ;;  %v5135_v58 = vld [vmem:[%s5700_s4 + $0x4c] ss:$16 sps:$4 sm:$0xff]   ;;  %v5140_v9 = vld [vmem:[%s5700_s4 + $0x48] ss:$16 sps:$4 sm:$0xff]  }
 0x324   :  { %v1274_v19 = vadd.f32 %v1227_v14, %v4871_v55  ;;  %v1276_v24 = vadd.f32 %v1268_v17, %v5731_v22  ;;  %v1229_v26 = vpop.f32.mrb[22].mxu0  ;;  %v1270_v27 = vpop.f32.mrb[30].mxu1  ;;  %v5159_v14 = vld [vmem:[%s5700_s4 + $0x8c] ss:$16 sps:$4 sm:$0xff]   ;;  %v5164_v17 = vld [vmem:[%s5700_s4 + $0x88] ss:$16 sps:$4 sm:$0xff]  }
 0x325   :  { %v1277_v29 = vsub.f32 0.0, %v1273_v2  ;;  %v1230_v30 = vpop.f32.mrb[23].mxu0  ;;  %v1271_v31 = vpop.f32.mrb[31].mxu1  ;;  %v5147_v2 = vld [vmem:[%s5700_s4 + $0x6c] ss:$16 sps:$4 sm:$0xff]  }
 0x326   :  { %v1282_v33 = vsub.f32 0.0, %v1274_v19  ;;  %v1288_v36 = vsub.f32 0.0, %v1276_v24  ;;  %v5170_v19 = vld [vmem:[%s5700_s4 + $0xac] ss:$16 sps:$4 sm:$0xff]   ;;  %v5176_v22 = vld [vmem:[%s5700_s4 + $0xa8] ss:$16 sps:$4 sm:$0xff]  }
 0x327   :  { %v1278_v34 = vmul.f32 1.442695, %v1277_v29  ;;  %v5182_v24 = vld [vmem:[%s5700_s4 + $0xcc] ss:$16 sps:$4 sm:$0xff]   ;;  %v5188_v26 = vld [vmem:[%s5700_s4 + $0xc8] ss:$16 sps:$4 sm:$0xff]  }
 0x328   :  { %v1283_v35 = vmul.f32 1.442695, %v1282_v33  ;;  %v1289_v11 = vmul.f32 1.442695, %v1288_v36  ;;  %v5194_v27 = vld [vmem:[%s5700_s4 + $0xec] ss:$16 sps:$4 sm:$0xff]  }
 0x329   :  { %4276 = vpow2.f32 %v1278_v34  ;;  %v5200_v29 = vld [vmem:[%s5700_s4 + $0xe8] ss:$16 sps:$4 sm:$0xff]  }
 0x32a   :  { %4278 = vpow2.f32 %v1283_v35  ;;  %v5732_v33 = vld [vmem:[#allocation20_spill] sm:$0xff]  ;;  %v5733_v35 = vld [vmem:[#allocation13_spill] sm:$0xff] }
 0x32b   :  { %4280 = vpow2.f32 %v1289_v11 }
 0x32c   :  { %4282 = vtanh.f32 %v1275_v13  ;;  %v5152_v13 = vld [vmem:[%s5700_s4 + $0x68] ss:$16 sps:$4 sm:$0xff]  }
 0x333   :  { %v4277_v38 = vpop.eup %4276 }
 0x334   :  { %v4279_v6 = vpop.eup %4278  ;;  %v1280_v37 = vadd.f32 1.0, %v4277_v38 }
 0x335   :  { %v1285_v55 = vadd.f32 1.0, %v4279_v6  ;;  %v4281_v40 = vpop.eup %4280  ;;  %v5734_v6 = vld [vmem:[#allocation22_spill] sm:$0xff] }
 0x336   :  { %4284 = vrcp.f32 %v1280_v37  ;;  %v4283_v25 = vpop.eup %4282  ;;  %v1291_v4 = vadd.f32 1.0, %v4281_v40 }
 0x337   :  { %4286 = vrcp.f32 %v1285_v55  ;;  %v5735_v55 = vld [vmem:[#allocation14_spill] sm:$0xff] }
 0x338   :  { %4288 = vrcp.f32 %v1291_v4 }
 0x340   :  { %v4285_v1 = vpop.eup %4284 }
 0x341   :  { %v4287_v23 = vpop.eup %4286  ;;  %v1294_v3 = vmul.f32 %v4285_v1, %v4283_v25 }
 0x342   :  { %v1293_v15 = vmul.f32 %v4287_v23, %v4957_v28  ;;  %v4289_v32 = vpop.eup %4288  ;;  %v5111_v28 = vld [vmem:[%s5700_s4 + $0xc] ss:$16 sps:$4 sm:$0xff]  }
 0x343   :  { %1850 = vmatprep.subr.bf16.mxu1 %v5111_v28 }
 0x344   :  { %v5083_v16 = vadd.f32 %v1294_v3, %v1293_v15 }
 0x346   :  { %4290 = vtanh.f32 %v5083_v16 }
 0x350   :  { %v4291_v57 = vpop.eup %4290 }
 0x351   :  { %v5086_v60 = vmul.f32 %v4291_v57, %v4289_v32 }
 0x353   :  { %v1307_v61 = vpack.c.bf16 %v5086_v60, %v5086_v60 }
 0x355   :  { %1533 = vmatmul.mubr.bf16.vlgmr.msra.gmra.mrb[24].mxu0 %v1307_v61  ;;  %1574 = vmatmul.mubr.bf16.vlgmr.msra.gmra.mrb[32].mxu1 %v1307_v61 }
 0x356   :  { %1810 = vmatpush1.bf16.msra.mxu0 %v4989_v41  ;;  %1841 = vmatprep.mubr.bf16.mxu0 %v5730_v20 }
 0x357   :  { %1811 = vmatprep.subr.bf16.mxu0 %v4996_v42  ;;  %1882 = vmatprep.mubr.bf16.mxu1 %v5730_v20 }
 0x358   :  { %1851 = vmatpush1.bf16.msra.mxu1 %v5116_v62 }
 0x359   :  { %1852 = vmatprep.subr.bf16.mxu1 %v5123_v63 }
 0x35a   :  { %1812 = vmatpush1.bf16.msra.mxu0 %v5001_v43 }
 0x35b   :  { %1813 = vmatprep.subr.bf16.mxu0 %v5008_v44 }
 0x35c   :  { %1853 = vmatpush1.bf16.msra.mxu1 %v5128_v7 }
 0x35d   :  { %1854 = vmatprep.subr.bf16.mxu1 %v5135_v58 }
 0x35e   :  { %1814 = vmatpush1.bf16.msra.mxu0 %v5013_v45 }
 0x35f   :  { %1815 = vmatprep.subr.bf16.mxu0 %v5020_v46 }
 0x360   :  { %1855 = vmatpush1.bf16.msra.mxu1 %v5140_v9 }
 0x361   :  { %1856 = vmatprep.subr.bf16.mxu1 %v5147_v2 }
 0x362   :  { %1816 = vmatpush1.bf16.msra.mxu0 %v5025_v47 }
 0x363   :  { %1817 = vmatprep.subr.bf16.mxu0 %v5032_v48 }
 0x364   :  { %1857 = vmatpush1.bf16.msra.mxu1 %v5152_v13 }
 0x365   :  { %1858 = vmatprep.subr.bf16.mxu1 %v5159_v14 }
 0x366   :  { %1818 = vmatpush1.bf16.msra.mxu0 %v5037_v49 }
 0x367   :  { %1819 = vmatprep.subr.bf16.mxu0 %v5043_v50 }
 0x368   :  { %1859 = vmatpush1.bf16.msra.mxu1 %v5164_v17 }
 0x369   :  { %1860 = vmatprep.subr.bf16.mxu1 %v5170_v19 }
 0x36a   :  { %1820 = vmatpush1.bf16.msra.mxu0 %v5049_v51 }
 0x36b   :  { %1821 = vmatprep.subr.bf16.mxu0 %v5055_v52 }
 0x36c   :  { %1861 = vmatpush1.bf16.msra.mxu1 %v5176_v22 }
 0x36d   :  { %1862 = vmatprep.subr.bf16.mxu1 %v5182_v24 }
 0x36e   :  { %1822 = vmatpush1.bf16.msra.mxu0 %v5061_v53 }
 0x36f   :  { %1823 = vmatprep.subr.bf16.mxu0 %v5067_v54 }
 0x370   :  { %1863 = vmatpush1.bf16.msra.mxu1 %v5188_v26 }
 0x371   :  { %1864 = vmatprep.subr.bf16.mxu1 %v5194_v27 }
 0x372   :  { %1824 = vmatpush1.bf16.msra.mxu0 %v5073_v10 }
 0x373   :  { %2118 = vmatprep.subr.bf16.mxu0 %v4984_v39 }
 0x374   :  { %1865 = vmatpush1.bf16.msra.mxu1 %v5200_v29 }
 0x375   :  { %2159 = vmatprep.subr.bf16.mxu1 %v5111_v28 }
 0x428   :  { %v1534_v30 = vpop.f32.mrb[24].mxu0  ;;  %v1575_v31 = vpop.f32.mrb[32].mxu1 }
 0x429   :  { %v1582_v34 = vadd.f32 %v1534_v30, %v5732_v33  ;;  %v1584_v36 = vadd.f32 %v1575_v31, %v5733_v35  ;;  %v1536_v11 = vpop.f32.mrb[25].mxu0  ;;  %v1577_v38 = vpop.f32.mrb[33].mxu1 }
 0x42a   :  { %v1583_v37 = vadd.f32 %v1536_v11, %v5734_v6  ;;  %v1585_v40 = vadd.f32 %v1577_v38, %v5735_v55  ;;  %v1538_v25 = vpop.f32.mrb[26].mxu0  ;;  %v1579_v1 = vpop.f32.mrb[34].mxu1 }
 0x42b   :  { %v1586_v23 = vsub.f32 0.0, %v1582_v34  ;;  %v1539_v3 = vpop.f32.mrb[27].mxu0  ;;  %v1580_v4 = vpop.f32.mrb[35].mxu1 }
 0x42c   :  { %v1591_v15 = vsub.f32 0.0, %v1583_v37  ;;  %v1597_v61 = vsub.f32 0.0, %v1585_v40 }
 0x42d   :  { %v1587_v32 = vmul.f32 1.442695, %v1586_v23 }
 0x42e   :  { %v1592_v57 = vmul.f32 1.442695, %v1591_v15  ;;  %v1598_v30 = vmul.f32 1.442695, %v1597_v61  ;;  %v5737_v61 = vld [vmem:[#allocation15_spill] sm:$0xff] }
 0x42f   :  { %4292 = vpow2.f32 %v1587_v32  ;;  %v5736_v32 = vld [vmem:[#allocation25_spill] sm:$0xff] }
 0x430   :  { %4294 = vpow2.f32 %v1592_v57 }
 0x431   :  { %4296 = vpow2.f32 %v1598_v30 }
 0x432   :  { %4298 = vtanh.f32 %v1584_v36 }
 0x439   :  { %v4293_v33 = vpop.eup %4292 }
 0x43a   :  { %v4295_v31 = vpop.eup %4294  ;;  %v1589_v35 = vadd.f32 1.0, %v4293_v33 }
 0x43b   :  { %v1594_v11 = vadd.f32 1.0, %v4295_v31  ;;  %v4297_v38 = vpop.eup %4296 }
 0x43c   :  { %4300 = vrcp.f32 %v1589_v35  ;;  %v4299_v6 = vpop.eup %4298  ;;  %v1600_v37 = vadd.f32 1.0, %v4297_v38  ;;  %v5738_v35 = vld [vmem:[#allocation26_spill] sm:$0xff]  ;;  %v5739_v38 = vld [vmem:[#allocation16_spill] sm:$0xff] }
 0x43d   :  { %4302 = vrcp.f32 %v1594_v11 }
 0x43e   :  { %4304 = vrcp.f32 %v1600_v37 }
 0x446   :  { %v4301_v34 = vpop.eup %4300 }
 0x447   :  { %v4303_v55 = vpop.eup %4302  ;;  %v1603_v25 = vmul.f32 %v4301_v34, %v4299_v6 }
 0x448   :  { %v1602_v1 = vmul.f32 %v4303_v55, %v5083_v16  ;;  %v4305_v40 = vpop.eup %4304 }
 0x44a   :  { %v5210_v23 = vadd.f32 %v1603_v25, %v1602_v1 }
 0x44c   :  { %4306 = vtanh.f32 %v5210_v23 }
 0x456   :  { %v4307_v3 = vpop.eup %4306 }
 0x457   :  { %v5213_v4 = vmul.f32 %v4307_v3, %v4305_v40 }
 0x459   :  { %v1616_v36 = vpack.c.bf16 %v5213_v4, %v5213_v4 }
 0x45b   :  { %1842 = vmatmul.mubr.bf16.vlgmr.msra.gmra.mrb[28].mxu0 %v1616_v36  ;;  %1883 = vmatmul.mubr.bf16.vlgmr.msra.gmra.mrb[36].mxu1 %v1616_v36 }
 0x45c   :  { %2119 = vmatpush1.bf16.msra.mxu0 %v4989_v41  ;;  %2160 = vmatpush1.bf16.msra.mxu1 %v5116_v62 }
 0x45d   :  { %2120 = vmatprep.subr.bf16.mxu0 %v4996_v42  ;;  %2161 = vmatprep.subr.bf16.mxu1 %v5123_v63 }
 0x45e   :  { %2150 = vmatprep.mubr.bf16.mxu0 %v5730_v20  ;;  %2191 = vmatprep.mubr.bf16.mxu1 %v5730_v20 }
 0x460   :  { %2121 = vmatpush1.bf16.msra.mxu0 %v5001_v43  ;;  %2162 = vmatpush1.bf16.msra.mxu1 %v5128_v7 }
 0x461   :  { %2122 = vmatprep.subr.bf16.mxu0 %v5008_v44  ;;  %2163 = vmatprep.subr.bf16.mxu1 %v5135_v58 }
 0x464   :  { %2123 = vmatpush1.bf16.msra.mxu0 %v5013_v45  ;;  %2164 = vmatpush1.bf16.msra.mxu1 %v5140_v9 }
 0x465   :  { %2124 = vmatprep.subr.bf16.mxu0 %v5020_v46  ;;  %2165 = vmatprep.subr.bf16.mxu1 %v5147_v2 }
 0x468   :  { %2125 = vmatpush1.bf16.msra.mxu0 %v5025_v47  ;;  %2166 = vmatpush1.bf16.msra.mxu1 %v5152_v13 }
 0x469   :  { %2126 = vmatprep.subr.bf16.mxu0 %v5032_v48  ;;  %2167 = vmatprep.subr.bf16.mxu1 %v5159_v14 }
 0x46c   :  { %2127 = vmatpush1.bf16.msra.mxu0 %v5037_v49  ;;  %2168 = vmatpush1.bf16.msra.mxu1 %v5164_v17 }
 0x46d   :  { %2128 = vmatprep.subr.bf16.mxu0 %v5043_v50  ;;  %2169 = vmatprep.subr.bf16.mxu1 %v5170_v19 }
 0x470   :  { %2129 = vmatpush1.bf16.msra.mxu0 %v5049_v51  ;;  %2170 = vmatpush1.bf16.msra.mxu1 %v5176_v22 }
 0x471   :  { %2130 = vmatprep.subr.bf16.mxu0 %v5055_v52  ;;  %2171 = vmatprep.subr.bf16.mxu1 %v5182_v24 }
 0x474   :  { %2131 = vmatpush1.bf16.msra.mxu0 %v5061_v53  ;;  %2172 = vmatpush1.bf16.msra.mxu1 %v5188_v26 }
 0x475   :  { %2132 = vmatprep.subr.bf16.mxu0 %v5067_v54  ;;  %2173 = vmatprep.subr.bf16.mxu1 %v5194_v27 }
 0x478   :  { %2133 = vmatpush1.bf16.msra.mxu0 %v5073_v10  ;;  %2174 = vmatpush1.bf16.msra.mxu1 %v5200_v29 }
 0x479   :  { %2427 = vmatprep.subr.bf16.mxu0 %v4984_v39  ;;  %2468 = vmatprep.subr.bf16.mxu1 %v5111_v28 }
 0x52e   :  { %v1843_v16 = vpop.f32.mrb[28].mxu0  ;;  %v1884_v15 = vpop.f32.mrb[36].mxu1 }
 0x52f   :  { %v1891_v57 = vadd.f32 %v1843_v16, %v5736_v32  ;;  %v1893_v30 = vadd.f32 %v1884_v15, %v5737_v61  ;;  %v1845_v33 = vpop.f32.mrb[29].mxu0  ;;  %v1886_v31 = vpop.f32.mrb[37].mxu1 }
 0x530   :  { %v1892_v11 = vadd.f32 %v1845_v33, %v5738_v35  ;;  %v1894_v6 = vadd.f32 %v1886_v31, %v5739_v38  ;;  %v1847_v34 = vpop.f32.mrb[30].mxu0  ;;  %v1888_v55 = vpop.f32.mrb[38].mxu1 }
 0x531   :  { %v1895_v25 = vsub.f32 0.0, %v1891_v57  ;;  %v1848_v37 = vpop.f32.mrb[31].mxu0  ;;  %v1889_v1 = vpop.f32.mrb[39].mxu1 }
 0x532   :  { %v1900_v39 = vsub.f32 0.0, %v1892_v11  ;;  %v1906_v36 = vsub.f32 0.0, %v1894_v6 }
 0x533   :  { %v1896_v40 = vmul.f32 1.442695, %v1895_v25 }
 0x534   :  { %v1901_v3 = vmul.f32 1.442695, %v1900_v39  ;;  %v1907_v16 = vmul.f32 1.442695, %v1906_v36 }
 0x535   :  { %4308 = vpow2.f32 %v1896_v40 }
 0x536   :  { %4310 = vpow2.f32 %v1901_v3 }
 0x537   :  { %4312 = vpow2.f32 %v1907_v16 }
 0x538   :  { %4314 = vtanh.f32 %v1893_v30 }
 0x53f   :  { %v4309_v32 = vpop.eup %4308 }
 0x540   :  { %v4311_v15 = vpop.eup %4310  ;;  %v1898_v61 = vadd.f32 1.0, %v4309_v32 }
 0x541   :  { %v1903_v33 = vadd.f32 1.0, %v4311_v15  ;;  %v4313_v31 = vpop.eup %4312 }
 0x542   :  { %4316 = vrcp.f32 %v1898_v61  ;;  %v4315_v35 = vpop.eup %4314  ;;  %v1909_v11 = vadd.f32 1.0, %v4313_v31 }
 0x543   :  { %4318 = vrcp.f32 %v1903_v33 }
 0x544   :  { %4320 = vrcp.f32 %v1909_v11 }
 0x54c   :  { %v4317_v57 = vpop.eup %4316 }
 0x54d   :  { %v4319_v38 = vpop.eup %4318  ;;  %v1912_v34 = vmul.f32 %v4317_v57, %v4315_v35 }
 0x54e   :  { %v1911_v55 = vmul.f32 %v4319_v38, %v5210_v23  ;;  %v4321_v6 = vpop.eup %4320 }
 0x550   :  { %v5256_v25 = vadd.f32 %v1912_v34, %v1911_v55 }
 0x552   :  { %4322 = vtanh.f32 %v5256_v25 }
 0x55c   :  { %v4323_v37 = vpop.eup %4322 }
 0x55d   :  { %v5259_v1 = vmul.f32 %v4323_v37, %v4321_v6  ;;  %v4222_v37 = vld [vmem:[%s5702_s6 + $0x4] ss:$8 sps:$4 sm:$0xff]  }
 0x55f   :  { %v1925_v30 = vpack.c.bf16 %v5259_v1, %v5259_v1 }
 0x561   :  { %2151 = vmatmul.mubr.bf16.vlgmr.msra.gmra.mrb[32].mxu0 %v1925_v30  ;;  %2192 = vmatmul.mubr.bf16.vlgmr.msra.gmra.mrb[40].mxu1 %v1925_v30 }
 0x562   :  { %2428 = vmatpush1.bf16.msra.mxu0 %v4989_v41  ;;  %2469 = vmatpush1.bf16.msra.mxu1 %v5116_v62 }
 0x563   :  { %2429 = vmatprep.subr.bf16.mxu0 %v4996_v42  ;;  %2470 = vmatprep.subr.bf16.mxu1 %v5123_v63 }
 0x564   :  { %2459 = vmatprep.mubr.bf16.mxu0 %v5730_v20  ;;  %2500 = vmatprep.mubr.bf16.mxu1 %v5730_v20 }
 0x566   :  { %2430 = vmatpush1.bf16.msra.mxu0 %v5001_v43  ;;  %2471 = vmatpush1.bf16.msra.mxu1 %v5128_v7 }
 0x567   :  { %2431 = vmatprep.subr.bf16.mxu0 %v5008_v44  ;;  %2472 = vmatprep.subr.bf16.mxu1 %v5135_v58  ;;  %v5740_v44 = vld [vmem:[#allocation17_spill] sm:$0xff] }
 0x56a   :  { %2432 = vmatpush1.bf16.msra.mxu0 %v5013_v45  ;;  %2473 = vmatpush1.bf16.msra.mxu1 %v5140_v9 }
 0x56b   :  { %2433 = vmatprep.subr.bf16.mxu0 %v5020_v46  ;;  %2474 = vmatprep.subr.bf16.mxu1 %v5147_v2 }
 0x56e   :  { %2434 = vmatpush1.bf16.msra.mxu0 %v5025_v47  ;;  %2475 = vmatpush1.bf16.msra.mxu1 %v5152_v13 }
 0x56f   :  { %2435 = vmatprep.subr.bf16.mxu0 %v5032_v48  ;;  %2476 = vmatprep.subr.bf16.mxu1 %v5159_v14 }
 0x572   :  { %2436 = vmatpush1.bf16.msra.mxu0 %v5037_v49  ;;  %2477 = vmatpush1.bf16.msra.mxu1 %v5164_v17  ;;  %v5741_v49 = vld [vmem:[#allocation18_spill] sm:$0xff] }
 0x573   :  { %2437 = vmatprep.subr.bf16.mxu0 %v5043_v50  ;;  %2478 = vmatprep.subr.bf16.mxu1 %v5170_v19 }
 0x576   :  { %2438 = vmatpush1.bf16.msra.mxu0 %v5049_v51  ;;  %2479 = vmatpush1.bf16.msra.mxu1 %v5176_v22 }
 0x577   :  { %2439 = vmatprep.subr.bf16.mxu0 %v5055_v52  ;;  %2480 = vmatprep.subr.bf16.mxu1 %v5182_v24 }
 0x57a   :  { %2440 = vmatpush1.bf16.msra.mxu0 %v5061_v53  ;;  %2481 = vmatpush1.bf16.msra.mxu1 %v5188_v26 }
 0x57b   :  { %2441 = vmatprep.subr.bf16.mxu0 %v5067_v54  ;;  %2482 = vmatprep.subr.bf16.mxu1 %v5194_v27 }
 0x57e   :  { %2442 = vmatpush1.bf16.msra.mxu0 %v5073_v10  ;;  %2483 = vmatpush1.bf16.msra.mxu1 %v5200_v29 }
 0x57f   :  { %2777 = vmatprep.subr.bf16.mxu1 %v5111_v28 }
 0x634   :  { %v2152_v41 = vpop.f32.mrb[32].mxu0  ;;  %v2193_v42 = vpop.f32.mrb[40].mxu1 }
 0x635   :  { %v2200_v43 = vadd.f32 %v2152_v41, %v4893_v56  ;;  %v2202_v45 = vadd.f32 %v2193_v42, %v5740_v44  ;;  %v2154_v46 = vpop.f32.mrb[33].mxu0  ;;  %v2195_v47 = vpop.f32.mrb[41].mxu1 }
 0x636   :  { %v2201_v48 = vadd.f32 %v2154_v46, %v4895_v12  ;;  %v2203_v50 = vadd.f32 %v2195_v47, %v5741_v49  ;;  %v2156_v51 = vpop.f32.mrb[34].mxu0  ;;  %v2197_v52 = vpop.f32.mrb[42].mxu1 }
 0x637   :  { %v2204_v53 = vsub.f32 0.0, %v2200_v43  ;;  %v2157_v54 = vpop.f32.mrb[35].mxu0  ;;  %v2198_v10 = vpop.f32.mrb[43].mxu1  ;;  %v5742_v43 = vld [vmem:[#allocation19_spill] sm:$0xff] }
 0x638   :  { %v2209_v23 = vsub.f32 0.0, %v2201_v48  ;;  %v2215_v40 = vsub.f32 0.0, %v2203_v50  ;;  %v5743_v48 = vld [vmem:[#allocation21_spill] sm:$0xff] }
 0x639   :  { %v2205_v39 = vmul.f32 1.442695, %v2204_v53 }
 0x63a   :  { %v2210_v28 = vmul.f32 1.442695, %v2209_v23  ;;  %v2216_v56 = vmul.f32 1.442695, %v2215_v40 }
 0x63b   :  { %4324 = vpow2.f32 %v2205_v39 }
 0x63c   :  { %4326 = vpow2.f32 %v2210_v28 }
 0x63d   :  { %4328 = vpow2.f32 %v2216_v56 }
 0x63e   :  { %4330 = vtanh.f32 %v2202_v45 }
 0x645   :  { %v4325_v3 = vpop.eup %4324 }
 0x646   :  { %v4327_v36 = vpop.eup %4326  ;;  %v2207_v16 = vadd.f32 1.0, %v4325_v3 }
 0x647   :  { %v2212_v12 = vadd.f32 1.0, %v4327_v36  ;;  %v4329_v32 = vpop.eup %4328 }
 0x648   :  { %4332 = vrcp.f32 %v2207_v16  ;;  %v4331_v15 = vpop.eup %4330  ;;  %v2218_v35 = vadd.f32 1.0, %v4329_v32 }
 0x649   :  { %4334 = vrcp.f32 %v2212_v12 }
 0x64a   :  { %4336 = vrcp.f32 %v2218_v35 }
 0x652   :  { %v4333_v61 = vpop.eup %4332 }
 0x653   :  { %v4335_v33 = vpop.eup %4334  ;;  %v2221_v31 = vmul.f32 %v4333_v61, %v4331_v15 }
 0x654   :  { %v2220_v57 = vmul.f32 %v4335_v33, %v5256_v25  ;;  %v4337_v34 = vpop.eup %4336  ;;  %v4217_v25 = vld [vmem:[%s5700_s4 + $0xe0] ss:$16 sps:$4 sm:$0xff]  }
 0x656   :  { %v5301_v38 = vadd.f32 %v2221_v31, %v2220_v57 }
 0x658   :  { %4338 = vtanh.f32 %v5301_v38 }
 0x662   :  { %v4339_v11 = vpop.eup %4338 }
 0x663   :  { %v5304_v55 = vmul.f32 %v4339_v11, %v4337_v34  ;;  %v4220_v11 = vld [vmem:[%s5702_s6] ss:$8 sps:$4 sm:$0xff]  }
 0x665   :  { %v2234_v6 = vpack.c.bf16 %v5304_v55, %v5304_v55 }
 0x667   :  { %2460 = vmatmul.mubr.bf16.vlgmr.msra.gmra.mrb[36].mxu0 %v2234_v6  ;;  %2501 = vmatmul.mubr.bf16.vlgmr.msra.gmra.mrb[44].mxu1 %v2234_v6 }
 0x668   :  { %2778 = vmatpush1.bf16.msra.mxu1 %v5116_v62  ;;  %2768 = vmatprep.mubr.bf16.mxu0 %v5730_v20  ;;  %v4198_v62 = vld [vmem:[%s5700_s4 + $0x4] ss:$16 sps:$4 sm:$0xff]  }
 0x669   :  { %2779 = vmatprep.subr.bf16.mxu1 %v5123_v63  ;;  %2809 = vmatprep.mubr.bf16.mxu1 %v5730_v20  ;;  %v4196_v63 = vld [vmem:[%s5700_s4] ss:$16 sps:$4 sm:$0xff]  }
 0x66a   :  { %2736 = vmatprep.subr.bf16.mxu0 %v4198_v62  ;;  %v4223_v62 = vld [vmem:[%s5702_s6 + $0x10] ss:$8 sps:$4 sm:$0xff]  }
 0x66b   :  { %2737 = vmatpush1.bf16.msra.mxu0 %v4196_v63  ;;  %v4228_v63 = vld [vmem:[%s5702_s6 + $0x24] ss:$8 sps:$4 sm:$0xff]  }
 0x66c   :  { %2780 = vmatpush1.bf16.msra.mxu1 %v5128_v7  ;;  %v4201_v7 = vld [vmem:[%s5700_s4 + $0x24] ss:$16 sps:$4 sm:$0xff]  }
 0x66d   :  { %2781 = vmatprep.subr.bf16.mxu1 %v5135_v58  ;;  %v4199_v58 = vld [vmem:[%s5700_s4 + $0x20] ss:$16 sps:$4 sm:$0xff]   ;;  %2738 = vmatprep.subr.bf16.mxu0 %v4201_v7 }
 0x66e   :  { %v4226_v7 = vld [vmem:[%s5702_s6 + $0x20] ss:$8 sps:$4 sm:$0xff]  }
 0x66f   :  { %2739 = vmatpush1.bf16.msra.mxu0 %v4199_v58  ;;  %v4231_v58 = vld [vmem:[%s5702_s6 + $0x34] ss:$8 sps:$4 sm:$0xff]  }
 0x670   :  { %2782 = vmatpush1.bf16.msra.mxu1 %v5140_v9  ;;  %v4204_v9 = vld [vmem:[%s5700_s4 + $0x44] ss:$16 sps:$4 sm:$0xff]  }
 0x671   :  { %2783 = vmatprep.subr.bf16.mxu1 %v5147_v2  ;;  %v4202_v2 = vld [vmem:[%s5700_s4 + $0x40] ss:$16 sps:$4 sm:$0xff]   ;;  %2740 = vmatprep.subr.bf16.mxu0 %v4204_v9 }
 0x672   :  { %v4229_v9 = vld [vmem:[%s5702_s6 + $0x30] ss:$8 sps:$4 sm:$0xff]  }
 0x673   :  { %2741 = vmatpush1.bf16.msra.mxu0 %v4202_v2  ;;  %v4234_v2 = vld [vmem:[%s5702_s6 + $0x44] ss:$8 sps:$4 sm:$0xff]  }
 0x674   :  { %2784 = vmatpush1.bf16.msra.mxu1 %v5152_v13  ;;  %v4207_v13 = vld [vmem:[%s5700_s4 + $0x64] ss:$16 sps:$4 sm:$0xff]  }
 0x675   :  { %2785 = vmatprep.subr.bf16.mxu1 %v5159_v14  ;;  %v4205_v14 = vld [vmem:[%s5700_s4 + $0x60] ss:$16 sps:$4 sm:$0xff]   ;;  %2742 = vmatprep.subr.bf16.mxu0 %v4207_v13 }
 0x676   :  { %v4232_v13 = vld [vmem:[%s5702_s6 + $0x40] ss:$8 sps:$4 sm:$0xff]  }
 0x677   :  { %2743 = vmatpush1.bf16.msra.mxu0 %v4205_v14  ;;  %v4237_v14 = vld [vmem:[%s5702_s6 + $0x54] ss:$8 sps:$4 sm:$0xff]  }
 0x678   :  { %2786 = vmatpush1.bf16.msra.mxu1 %v5164_v17  ;;  %v4210_v17 = vld [vmem:[%s5700_s4 + $0x84] ss:$16 sps:$4 sm:$0xff]  }
 0x679   :  { %2787 = vmatprep.subr.bf16.mxu1 %v5170_v19  ;;  %v4208_v19 = vld [vmem:[%s5700_s4 + $0x80] ss:$16 sps:$4 sm:$0xff]   ;;  %2744 = vmatprep.subr.bf16.mxu0 %v4210_v17 }
 0x67a   :  { %v4235_v17 = vld [vmem:[%s5702_s6 + $0x50] ss:$8 sps:$4 sm:$0xff]  }
 0x67b   :  { %2745 = vmatpush1.bf16.msra.mxu0 %v4208_v19  ;;  %v4240_v19 = vld [vmem:[%s5702_s6 + $0x64] ss:$8 sps:$4 sm:$0xff]  }
 0x67c   :  { %2788 = vmatpush1.bf16.msra.mxu1 %v5176_v22  ;;  %v4211_v22 = vld [vmem:[%s5700_s4 + $0xa0] ss:$16 sps:$4 sm:$0xff]  }
 0x67d   :  { %2789 = vmatprep.subr.bf16.mxu1 %v5182_v24  ;;  %v4213_v24 = vld [vmem:[%s5700_s4 + $0xa4] ss:$16 sps:$4 sm:$0xff]  }
 0x67e   :  { %2746 = vmatprep.subr.bf16.mxu0 %v4213_v24  ;;  %v4243_v24 = vld [vmem:[%s5702_s6 + $0x74] ss:$8 sps:$4 sm:$0xff]  }
 0x67f   :  { %2747 = vmatpush1.bf16.msra.mxu0 %v4211_v22  ;;  %v4238_v22 = vld [vmem:[%s5702_s6 + $0x60] ss:$8 sps:$4 sm:$0xff]  }
 0x680   :  { %2790 = vmatpush1.bf16.msra.mxu1 %v5188_v26  ;;  %v4216_v26 = vld [vmem:[%s5700_s4 + $0xc4] ss:$16 sps:$4 sm:$0xff]  }
 0x681   :  { %2791 = vmatprep.subr.bf16.mxu1 %v5194_v27  ;;  %v4214_v27 = vld [vmem:[%s5700_s4 + $0xc0] ss:$16 sps:$4 sm:$0xff]   ;;  %2748 = vmatprep.subr.bf16.mxu0 %v4216_v26 }
 0x682   :  { %v4241_v26 = vld [vmem:[%s5702_s6 + $0x70] ss:$8 sps:$4 sm:$0xff]  }
 0x683   :  { %2749 = vmatpush1.bf16.msra.mxu0 %v4214_v27  ;;  %v2855_v27 = vpack.c.bf16 %v4960_v0, %v4915_v18  ;;  %v5744_v18 = vld [vmem:[#allocation23_spill] sm:$0xff] }
 0x684   :  { %2792 = vmatpush1.bf16.msra.mxu1 %v5200_v29  ;;  %v4219_v29 = vld [vmem:[%s5700_s4 + $0xe4] ss:$16 sps:$4 sm:$0xff]  }
 0x685   :  { %2750 = vmatprep.subr.bf16.mxu0 %v4219_v29  ;;  %v2856_v29 = vpack.c.bf16 %v5213_v4, %v5086_v60  ;;  %v5745_v60 = vld [vmem:[#allocation24_spill] sm:$0xff] }
 0x687   :  { %2751 = vmatpush1.bf16.msra.mxu0 %v4217_v25  ;;  %v2857_v25 = vpack.c.bf16 %v5304_v55, %v5259_v1 }
 0x688   :  { %2967 = vmatprep.subr.bf16.mxu0 %v4222_v37 }
 0x73a   :  { %v2461_v30 = vpop.f32.mrb[36].mxu0  ;;  %v2502_v41 = vpop.f32.mrb[44].mxu1 }
 0x73b   :  { %v2509_v42 = vadd.f32 %v2461_v30, %v4897_v21  ;;  %v2511_v44 = vadd.f32 %v2502_v41, %v5742_v43  ;;  %v2463_v45 = vpop.f32.mrb[37].mxu0  ;;  %v2504_v46 = vpop.f32.mrb[45].mxu1 }
 0x73c   :  { %v2510_v47 = vadd.f32 %v2463_v45, %v4899_v59  ;;  %v2512_v49 = vadd.f32 %v2504_v46, %v5743_v48  ;;  %v2465_v50 = vpop.f32.mrb[38].mxu0  ;;  %v2506_v51 = vpop.f32.mrb[46].mxu1 }
 0x73d   :  { %v2513_v52 = vsub.f32 0.0, %v2509_v42  ;;  %v2466_v53 = vpop.f32.mrb[39].mxu0  ;;  %v2507_v54 = vpop.f32.mrb[47].mxu1 }
 0x73e   :  { %v2518_v10 = vsub.f32 0.0, %v2510_v47  ;;  %v2524_v28 = vsub.f32 0.0, %v2512_v49  ;;  %v4443_v54 = vmov 1966171168  }
 0x73f   :  { %v2514_v23 = vmul.f32 1.442695, %v2513_v52 }
 0x740   :  { %v2519_v39 = vmul.f32 1.442695, %v2518_v10  ;;  %v2525_v21 = vmul.f32 1.442695, %v2524_v28  ;;  %v3045_v10 = vunpack.c.l.s4 %v4443_v54 }
 0x741   :  { %4340 = vpow2.f32 %v2514_v23  ;;  %v2875_v23 = vld [vmem:[%s5703_s7] sm:$0x3]  ;;  %s4444_s7 = smov [#allocation6]  }
 0x742   :  { %4342 = vpow2.f32 %v2519_v39  ;;  %s3733_s16 = sshll.u32 %s4444_s7, 4  ;;  %s3734_s16 = int_to_ptr.vmem [resolvable:$true] %s3733_s16 }
 0x743   :  { %4344 = vpow2.f32 %v2525_v21  ;;  %v5746_v21 = vld [vmem:[#allocation11_spill] sm:$0xff]  ;;  %s4372_s17 = scalar_lea.vmem %s3734_s16, 128  ;;  %p4377_p1 = scmp.lt.s32.totalorder %s3734_s16, %s3734_s16 }
 0x744   :  { %4346 = vtanh.f32 %v2511_v44  ;;  %p4373_p0 = scmp.ne.s32.totalorder %s3734_s16, %s4372_s17  ;;  %p4378_p2 = scmp.lt.s32.totalorder %s4372_s17, %s4372_s17 }
 0x746   :  { %p4379_p3 = por %p4378_p2, %p4377_p1 }
 0x748   :  { %p4380_p4 = pnand %p4379_p3, %p4373_p0 }
 0x74b   :  { %v4341_v40 = vpop.eup %4340 }
 0x74c   :  { %v4343_v56 = vpop.eup %4342  ;;  %v2516_v3 = vadd.f32 1.0, %v4341_v40  ;;  %v5747_v40 = vsub.s32 0, %v5746_v21 }
 0x74d   :  { %v2521_v59 = vadd.f32 1.0, %v4343_v56  ;;  %v4345_v36 = vpop.eup %4344 }
 0x74e   :  { %4348 = vrcp.f32 %v2516_v3  ;;  %v4347_v16 = vpop.eup %4346  ;;  %v2527_v61 = vadd.f32 1.0, %v4345_v36  ;;  %v5452_v56 = vrot.slane %v2875_v23, %v5747_v40  ;;  %v5748_v36 = vsub.s32 1, %v5746_v21 }
 0x74f   :  { %4350 = vrcp.f32 %v2521_v59  ;;  %v3046_v59 = vunpack.c.0.s8 %v3045_v10 }
 0x750   :  { %4352 = vrcp.f32 %v2527_v61 }
 0x758   :  { %v4349_v12 = vpop.eup %4348 }
 0x759   :  { %v4351_v32 = vpop.eup %4350  ;;  %v2530_v15 = vmul.f32 %v4349_v12, %v4347_v16  ;;  %v5456_v16 = vrot.slane %v2875_v23, %v5748_v36 }
 0x75a   :  { %v2529_v33 = vmul.f32 %v4351_v32, %v5301_v38  ;;  %v4353_v35 = vpop.eup %4352  ;;  %v4225_v38 = vld [vmem:[%s5702_s6 + $0x14] ss:$8 sps:$4 sm:$0xff]  }
 0x75c   :  { %v5381_v31 = vadd.f32 %v2530_v15, %v2529_v33 }
 0x75e   :  { %4354 = vtanh.f32 %v5381_v31 }
 0x768   :  { %v4355_v57 = vpop.eup %4354 }
 0x769   :  { %v5384_v34 = vmul.f32 %v4355_v57, %v4353_v35 }
 0x76b   :  { %v2543_v6 = vpack.c.bf16 %v5384_v34, %v5384_v34 }
 0x76d   :  { %2769 = vmatmul.mubr.bf16.vlgmr.msra.gmra.mrb[40].mxu0 %v2543_v6  ;;  %2810 = vmatmul.mubr.bf16.vlgmr.msra.gmra.mrb[48].mxu1 %v2543_v6 }
 0x76e   :  { %2968 = vmatpush1.bf16.msra.mxu0 %v4220_v11  ;;  %2999 = vmatprep.mubr.bf16.mxu0 %v5730_v20  ;;  %v5461_v11 = vsub.s32 %v3046_v59, %v5746_v21 }
 0x76f   :  { %2969 = vmatprep.subr.bf16.mxu0 %v4225_v38 }
 0x772   :  { %2970 = vmatpush1.bf16.msra.mxu0 %v4223_v62 }
 0x773   :  { %2971 = vmatprep.subr.bf16.mxu0 %v4228_v63 }
 0x776   :  { %2972 = vmatpush1.bf16.msra.mxu0 %v4226_v7 }
 0x777   :  { %2973 = vmatprep.subr.bf16.mxu0 %v4231_v58 }
 0x77a   :  { %2974 = vmatpush1.bf16.msra.mxu0 %v4229_v9 }
 0x77b   :  { %2975 = vmatprep.subr.bf16.mxu0 %v4234_v2 }
 0x77e   :  { %2976 = vmatpush1.bf16.msra.mxu0 %v4232_v13 }
 0x77f   :  { %2977 = vmatprep.subr.bf16.mxu0 %v4237_v14 }
 0x782   :  { %2978 = vmatpush1.bf16.msra.mxu0 %v4235_v17 }
 0x783   :  { %2979 = vmatprep.subr.bf16.mxu0 %v4240_v19  ;;  %v5749_v19 = vlaneseq }
 0x785   :  { %vm5469_vm1 = vcmp.lt.s32.totalorder %v5749_v19, 256 }
 0x786   :  { %2980 = vmatpush1.bf16.msra.mxu0 %v4238_v22 }
 0x787   :  { %2981 = vmatprep.subr.bf16.mxu0 %v4243_v24 }
 0x78a   :  { %2982 = vmatpush1.bf16.msra.mxu0 %v4241_v26 }
 0x78d   :  { %3000 = vmatmul.mubr.bf16.vlgmr.msra.gmra.mrb[44].mxu0 %v2855_v27 }
 0x78e   :  { %3009 = vmatprep.mubr.bf16.mxu0 %v5730_v20 }
 0x795   :  { %3010 = vmatmul.mubr.bf16.gmra.mrb[48].mxu0 %v2856_v29 }
 0x796   :  { %3019 = vmatprep.mubr.bf16.mxu0 %v5730_v20 }
 0x79d   :  { %3020 = vmatmul.mubr.bf16.gmra.mrb[52].mxu0 %v2857_v25 }
 0x79e   :  { %3029 = vmatprep.mubr.bf16.mxu0 %v5730_v20 }
 0x840   :  { %v2770_v37 = vpop.f32.mrb[40].mxu0  ;;  %v2811_v30 = vpop.f32.mrb[48].mxu1 }
 0x841   :  { %v2818_v41 = vadd.f32 %v2770_v37, %v4901_v8  ;;  %v2820_v0 = vadd.f32 %v2811_v30, %v5744_v18  ;;  %v2772_v42 = vpop.f32.mrb[41].mxu0  ;;  %v2813_v43 = vpop.f32.mrb[49].mxu1 }
 0x842   :  { %v2819_v44 = vadd.f32 %v2772_v42, %v4903_v5  ;;  %v2821_v4 = vadd.f32 %v2813_v43, %v5745_v60  ;;  %v2774_v45 = vpop.f32.mrb[42].mxu0  ;;  %v2815_v46 = vpop.f32.mrb[50].mxu1 }
 0x843   :  { %v2822_v47 = vsub.f32 0.0, %v2818_v41  ;;  %v2775_v48 = vpop.f32.mrb[43].mxu0  ;;  %v2816_v1 = vpop.f32.mrb[51].mxu1 }
 0x844   :  { %v2827_v55 = vsub.f32 0.0, %v2819_v44  ;;  %v2833_v50 = vsub.f32 0.0, %v2821_v4 }
 0x845   :  { %v2823_v49 = vmul.f32 1.442695, %v2822_v47 }
 0x846   :  { %v2828_v20 = vmul.f32 1.442695, %v2827_v55  ;;  %v2834_v8 = vmul.f32 1.442695, %v2833_v50 }
 0x847   :  { %4356 = vpow2.f32 %v2823_v49 }
 0x848   :  { %4358 = vpow2.f32 %v2828_v20 }
 0x849   :  { %4360 = vpow2.f32 %v2834_v8 }
 0x84a   :  { %4362 = vtanh.f32 %v2820_v0 }
 0x851   :  { %v4357_v51 = vpop.eup %4356 }
 0x852   :  { %v4359_v52 = vpop.eup %4358  ;;  %v2825_v53 = vadd.f32 1.0, %v4357_v51 }
 0x853   :  { %v2830_v5 = vadd.f32 1.0, %v4359_v52  ;;  %v4361_v39 = vpop.eup %4360 }
 0x854   :  { %4364 = vrcp.f32 %v2825_v53  ;;  %v4363_v28 = vpop.eup %4362  ;;  %v2836_v15 = vadd.f32 1.0, %v4361_v39 }
 0x855   :  { %4366 = vrcp.f32 %v2830_v5 }
 0x856   :  { %4368 = vrcp.f32 %v2836_v15 }
 0x85e   :  { %v4365_v3 = vpop.eup %4364 }
 0x85f   :  { %v4367_v12 = vpop.eup %4366  ;;  %v2839_v32 = vmul.f32 %v4365_v3, %v4363_v28 }
 0x860   :  { %v2838_v61 = vmul.f32 %v4367_v12, %v5381_v31  ;;  %v3001_v33 = vpop.f32.mrb[44].mxu0  ;;  %v4369_v50 = vpop.eup %4368 }
 0x861   :  { %v3002_v35 = vadd.f32 %v3001_v33, %v5452_v56  ;;  %v3003_v57 = vpop.f32.mrb[45].mxu0 }
 0x862   :  { %v2840_v6 = vadd.f32 %v2839_v32, %v2838_v61  ;;  %v3004_v38 = vadd.f32 %v3003_v57, %v5456_v16  ;;  %v3005_v62 = vpop.f32.mrb[46].mxu0 }
 0x863   :  { %v3006_v63 = vadd.f32 %v3005_v62, %v5452_v56  ;;  %v3007_v7 = vpop.f32.mrb[47].mxu0 }
 0x864   :  { %2846 = vst [vmem:[#allocation8] sm:$0xff] %v2840_v6  ;;  %v3042_v58 = vcombine.low %v3002_v35, %v3004_v38  ;;  %v3043_v9 = vcombine.high %v3002_v35, %v3004_v38  ;;  %v3008_v31 = vadd.f32 %v3007_v7, %v5456_v16  ;;  %4370 = vtanh.f32 %v2840_v6 }
 0x866   :  { %v3050_v2 = vrot.slane %v3042_v58, %v5461_v11  ;;  %v3057_v13 = vrot.slane %v3043_v9, %v5461_v11  ;;  %v3129_v14 = vcombine.low %v3006_v63, %v3008_v31  ;;  %v3130_v17 = vcombine.high %v3006_v63, %v3008_v31 }
 0x868   :  { %v3058_v24 = vcombine.high %v3050_v2, %v3050_v2  ;;  %v3059_v26 = vcombine.high %v3057_v13, %v3057_v13  ;;  %v3066_v27 = vrot.slane %v3050_v2, %v5461_v11  ;;  %v3073_v29 = vrot.slane %v3057_v13, %v5461_v11  ;;  %v3011_v25 = vpop.f32.mrb[48].mxu0 }
 0x869   :  { %v3137_v37 = vrot.slane %v3129_v14, %v5461_v11  ;;  %v3144_v30 = vrot.slane %v3130_v17, %v5461_v11  ;;  %v3012_v41 = vadd.f32 %v3011_v25, %v5452_v56  ;;  %v3013_v18 = vpop.f32.mrb[49].mxu0 }
 0x86a   :  { %v3080_v0 = vrot.slane %v3058_v24, %v5461_v11  ;;  %v3087_v42 = vrot.slane %v3059_v26, %v5461_v11  ;;  %v3088_v43 = vcombine.high %v3066_v27, %v3066_v27  ;;  %v3089_v44 = vcombine.high %v3073_v29, %v3073_v29  ;;  %3104 = vst.msk [vmem:[#allocation4] ss:$8 sm:$0x3] %vm5469_vm1, %v3066_v27  ;;  %v3015_v60 = vpop.f32.mrb[50].mxu0 }
 0x86b   :  { %3116 = vst.msk [vmem:[#allocation4 + $0x40] ss:$8 sm:$0x3] %vm5469_vm1, %v3073_v29  ;;  %v3145_v4 = vcombine.high %v3137_v37, %v3137_v37  ;;  %v3146_v45 = vcombine.high %v3144_v30, %v3144_v30  ;;  %v3153_v46 = vrot.slane %v3137_v37, %v5461_v11  ;;  %v3160_v47 = vrot.slane %v3144_v30, %v5461_v11  ;;  %v3017_v48 = vpop.f32.mrb[51].mxu0 }
 0x86c   :  { %v3090_v1 = vcombine.high %v3080_v0, %v3080_v0  ;;  %v3091_v55 = vcombine.high %v3087_v42, %v3087_v42  ;;  %3107 = vst.msk [vmem:[#allocation4 + $0x10] ss:$8 sm:$0x3] %vm5469_vm1, %v3080_v0  ;;  %3110 = vst.msk [vmem:[#allocation4 + $0x20] ss:$8 sm:$0x3] %vm5469_vm1, %v3088_v43  ;;  %v3014_v49 = vadd.f32 %v3013_v18, %v5456_v16 }
 0x86d   :  { %3119 = vst.msk [vmem:[#allocation4 + $0x50] ss:$8 sm:$0x3] %vm5469_vm1, %v3087_v42  ;;  %3122 = vst.msk [vmem:[#allocation4 + $0x60] ss:$8 sm:$0x3] %vm5469_vm1, %v3089_v44  ;;  %v3016_v20 = vadd.f32 %v3015_v60, %v5452_v56  ;;  %v3167_v8 = vrot.slane %v3145_v4, %v5461_v11  ;;  %v3174_v51 = vrot.slane %v3146_v45, %v5461_v11 }
 0x86e   :  { %v3175_v52 = vcombine.high %v3153_v46, %v3153_v46  ;;  %v3176_v53 = vcombine.high %v3160_v47, %v3160_v47  ;;  %3188 = vst.msk [vmem:[#allocation4 + $0x1] ss:$8 sm:$0x3] %vm5469_vm1, %v3153_v46  ;;  %3200 = vst.msk [vmem:[#allocation4 + $0x41] ss:$8 sm:$0x3] %vm5469_vm1, %v3160_v47  ;;  %v4371_v5 = vpop.eup %4370  ;;  %v3213_v54 = vcombine.low %v3012_v41, %v3014_v49 }
 0x86f   :  { %3113 = vst.msk [vmem:[#allocation4 + $0x30] ss:$8 sm:$0x3] %vm5469_vm1, %v3090_v1  ;;  %3125 = vst.msk [vmem:[#allocation4 + $0x70] ss:$8 sm:$0x3] %vm5469_vm1, %v3091_v55  ;;  %v3214_v10 = vcombine.high %v3012_v41, %v3014_v49  ;;  %v3018_v23 = vadd.f32 %v3017_v48, %v5456_v16  ;;  %v3177_v39 = vcombine.high %v3167_v8, %v3167_v8 }
 0x870   :  { %v3178_v28 = vcombine.high %v3174_v51, %v3174_v51  ;;  %3191 = vst.msk [vmem:[#allocation4 + $0x11] ss:$8 sm:$0x3] %vm5469_vm1, %v3167_v8  ;;  %3194 = vst.msk [vmem:[#allocation4 + $0x21] ss:$8 sm:$0x3] %vm5469_vm1, %v3175_v52  ;;  %v2842_v21 = vmul.f32 %v4371_v5, %v4369_v50  ;;  %v3221_v40 = vrot.slane %v3213_v54, %v5461_v11 }
 0x871   :  { %3203 = vst.msk [vmem:[#allocation4 + $0x51] ss:$8 sm:$0x3] %vm5469_vm1, %v3174_v51  ;;  %3206 = vst.msk [vmem:[#allocation4 + $0x61] ss:$8 sm:$0x3] %vm5469_vm1, %v3176_v53  ;;  %v3228_v3 = vrot.slane %v3214_v10, %v5461_v11  ;;  %v3297_v59 = vcombine.low %v3016_v20, %v3018_v23  ;;  %v3298_v36 = vcombine.high %v3016_v20, %v3018_v23 }
 0x872   :  { %v3021_v12 = vpop.f32.mrb[52].mxu0  ;;  %3197 = vst.msk [vmem:[#allocation4 + $0x31] ss:$8 sm:$0x3] %vm5469_vm1, %v3177_v39  ;;  %v2858_v61 = vpack.c.bf16 %v2842_v21, %v5384_v34  ;;  %2845 = vst [vmem:[#allocation6] sm:$0xff] %v2842_v21  ;;  %v3229_v33 = vcombine.high %v3221_v40, %v3221_v40  ;;  %v3237_v57 = vrot.slane %v3221_v40, %v5461_v11 }
 0x873   :  { %3209 = vst.msk [vmem:[#allocation4 + $0x71] ss:$8 sm:$0x3] %vm5469_vm1, %v3178_v28  ;;  %v3022_v32 = vadd.f32 %v3021_v12, %v5452_v56  ;;  %v3023_v15 = vpop.f32.mrb[53].mxu0  ;;  %v3230_v35 = vcombine.high %v3228_v3, %v3228_v3  ;;  %v3244_v6 = vrot.slane %v3228_v3, %v5461_v11  ;;  %v3305_v62 = vrot.slane %v3297_v59, %v5461_v11 }
 0x874   :  { %v3025_v38 = vpop.f32.mrb[54].mxu0  ;;  %v3312_v63 = vrot.slane %v3298_v36, %v5461_v11  ;;  %v3024_v7 = vadd.f32 %v3023_v15, %v5456_v16  ;;  %3030 = vmatmul.mubr.bf16.gmra.mrb[56].mxu0 %v2858_v61  ;;  %v3251_v34 = vrot.slane %v3229_v33, %v5461_v11  ;;  %v3259_v2 = vcombine.high %v3237_v57, %v3237_v57 }
 0x875   :  { %v3026_v58 = vadd.f32 %v3025_v38, %v5452_v56  ;;  %v3027_v9 = vpop.f32.mrb[55].mxu0  ;;  %v3258_v31 = vrot.slane %v3230_v35, %v5461_v11  ;;  %v3260_v13 = vcombine.high %v3244_v6, %v3244_v6  ;;  %3272 = vst.msk [vmem:[#allocation4 + $0x2] ss:$8 sm:$0x3] %vm5469_vm1, %v3237_v57  ;;  %v3313_v14 = vcombine.high %v3305_v62, %v3305_v62 }
 0x876   :  { %3284 = vst.msk [vmem:[#allocation4 + $0x42] ss:$8 sm:$0x3] %vm5469_vm1, %v3244_v6  ;;  %v3314_v17 = vcombine.high %v3312_v63, %v3312_v63  ;;  %v3321_v19 = vrot.slane %v3305_v62, %v5461_v11  ;;  %v3328_v24 = vrot.slane %v3312_v63, %v5461_v11  ;;  %v3261_v26 = vcombine.high %v3251_v34, %v3251_v34 }
 0x877   :  { %v3262_v27 = vcombine.high %v3258_v31, %v3258_v31  ;;  %3275 = vst.msk [vmem:[#allocation4 + $0x12] ss:$8 sm:$0x3] %vm5469_vm1, %v3251_v34  ;;  %3278 = vst.msk [vmem:[#allocation4 + $0x22] ss:$8 sm:$0x3] %vm5469_vm1, %v3259_v2  ;;  %v3381_v29 = vcombine.low %v3022_v32, %v3024_v7  ;;  %v3382_v25 = vcombine.high %v3022_v32, %v3024_v7 }
 0x878   :  { %3287 = vst.msk [vmem:[#allocation4 + $0x52] ss:$8 sm:$0x3] %vm5469_vm1, %v3258_v31  ;;  %3290 = vst.msk [vmem:[#allocation4 + $0x62] ss:$8 sm:$0x3] %vm5469_vm1, %v3260_v13  ;;  %v3335_v37 = vrot.slane %v3313_v14, %v5461_v11  ;;  %v3342_v30 = vrot.slane %v3314_v17, %v5461_v11  ;;  %v3343_v41 = vcombine.high %v3321_v19, %v3321_v19 }
 0x879   :  { %v3344_v18 = vcombine.high %v3328_v24, %v3328_v24  ;;  %3356 = vst.msk [vmem:[#allocation4 + $0x3] ss:$8 sm:$0x3] %vm5469_vm1, %v3321_v19  ;;  %3368 = vst.msk [vmem:[#allocation4 + $0x43] ss:$8 sm:$0x3] %vm5469_vm1, %v3328_v24  ;;  %v3389_v0 = vrot.slane %v3381_v29, %v5461_v11  ;;  %v3396_v42 = vrot.slane %v3382_v25, %v5461_v11 }
 0x87a   :  { %3281 = vst.msk [vmem:[#allocation4 + $0x32] ss:$8 sm:$0x3] %vm5469_vm1, %v3261_v26  ;;  %3293 = vst.msk [vmem:[#allocation4 + $0x72] ss:$8 sm:$0x3] %vm5469_vm1, %v3262_v27  ;;  %v3028_v43 = vadd.f32 %v3027_v9, %v5456_v16  ;;  %v3345_v44 = vcombine.high %v3335_v37, %v3335_v37  ;;  %v3346_v60 = vcombine.high %v3342_v30, %v3342_v30 }
 0x87b   :  { %3359 = vst.msk [vmem:[#allocation4 + $0x13] ss:$8 sm:$0x3] %vm5469_vm1, %v3335_v37  ;;  %3362 = vst.msk [vmem:[#allocation4 + $0x23] ss:$8 sm:$0x3] %vm5469_vm1, %v3343_v41  ;;  %v3397_v4 = vcombine.high %v3389_v0, %v3389_v0  ;;  %v3398_v45 = vcombine.high %v3396_v42, %v3396_v42  ;;  %v3405_v46 = vrot.slane %v3389_v0, %v5461_v11 }
 0x87c   :  { %3371 = vst.msk [vmem:[#allocation4 + $0x53] ss:$8 sm:$0x3] %vm5469_vm1, %v3342_v30  ;;  %3374 = vst.msk [vmem:[#allocation4 + $0x63] ss:$8 sm:$0x3] %vm5469_vm1, %v3344_v18  ;;  %v3412_v47 = vrot.slane %v3396_v42, %v5461_v11  ;;  %v3465_v48 = vcombine.low %v3026_v58, %v3028_v43  ;;  %v3466_v1 = vcombine.high %v3026_v58, %v3028_v43 }
 0x87d   :  { %3365 = vst.msk [vmem:[#allocation4 + $0x33] ss:$8 sm:$0x3] %vm5469_vm1, %v3345_v44  ;;  %3377 = vst.msk [vmem:[#allocation4 + $0x73] ss:$8 sm:$0x3] %vm5469_vm1, %v3346_v60  ;;  %v3419_v55 = vrot.slane %v3397_v4, %v5461_v11  ;;  %v3426_v49 = vrot.slane %v3398_v45, %v5461_v11  ;;  %v3427_v20 = vcombine.high %v3405_v46, %v3405_v46 }
 0x87e   :  { %v3428_v50 = vcombine.high %v3412_v47, %v3412_v47  ;;  %3440 = vst.msk [vmem:[#allocation4 + $0x4] ss:$8 sm:$0x3] %vm5469_vm1, %v3405_v46  ;;  %3452 = vst.msk [vmem:[#allocation4 + $0x44] ss:$8 sm:$0x3] %vm5469_vm1, %v3412_v47  ;;  %v3473_v8 = vrot.slane %v3465_v48, %v5461_v11  ;;  %v3480_v51 = vrot.slane %v3466_v1, %v5461_v11 }
 0x87f   :  { %v3429_v52 = vcombine.high %v3419_v55, %v3419_v55  ;;  %v3430_v53 = vcombine.high %v3426_v49, %v3426_v49  ;;  %3443 = vst.msk [vmem:[#allocation4 + $0x14] ss:$8 sm:$0x3] %vm5469_vm1, %v3419_v55  ;;  %3446 = vst.msk [vmem:[#allocation4 + $0x24] ss:$8 sm:$0x3] %vm5469_vm1, %v3427_v20 }
 0x880   :  { %3455 = vst.msk [vmem:[#allocation4 + $0x54] ss:$8 sm:$0x3] %vm5469_vm1, %v3426_v49  ;;  %3458 = vst.msk [vmem:[#allocation4 + $0x64] ss:$8 sm:$0x3] %vm5469_vm1, %v3428_v50  ;;  %v3481_v5 = vcombine.high %v3473_v8, %v3473_v8  ;;  %v3482_v54 = vcombine.high %v3480_v51, %v3480_v51  ;;  %v3489_v10 = vrot.slane %v3473_v8, %v5461_v11 }
 0x881   :  { %v3496_v23 = vrot.slane %v3480_v51, %v5461_v11  ;;  %3449 = vst.msk [vmem:[#allocation4 + $0x34] ss:$8 sm:$0x3] %vm5469_vm1, %v3429_v52  ;;  %3461 = vst.msk [vmem:[#allocation4 + $0x74] ss:$8 sm:$0x3] %vm5469_vm1, %v3430_v53 }
 0x882   :  { %v3503_v39 = vrot.slane %v3481_v5, %v5461_v11  ;;  %v3510_v28 = vrot.slane %v3482_v54, %v5461_v11  ;;  %v3511_v21 = vcombine.high %v3489_v10, %v3489_v10  ;;  %3524 = vst.msk [vmem:[#allocation4 + $0x5] ss:$8 sm:$0x3] %vm5469_vm1, %v3489_v10 }
 0x883   :  { %v3512_v40 = vcombine.high %v3496_v23, %v3496_v23  ;;  %3536 = vst.msk [vmem:[#allocation4 + $0x45] ss:$8 sm:$0x3] %vm5469_vm1, %v3496_v23 }
 0x884   :  { %v3513_v3 = vcombine.high %v3503_v39, %v3503_v39  ;;  %v3514_v59 = vcombine.high %v3510_v28, %v3510_v28  ;;  %3527 = vst.msk [vmem:[#allocation4 + $0x15] ss:$8 sm:$0x3] %vm5469_vm1, %v3503_v39  ;;  %3530 = vst.msk [vmem:[#allocation4 + $0x25] ss:$8 sm:$0x3] %vm5469_vm1, %v3511_v21 }
 0x885   :  { %3539 = vst.msk [vmem:[#allocation4 + $0x55] ss:$8 sm:$0x3] %vm5469_vm1, %v3510_v28  ;;  %3542 = vst.msk [vmem:[#allocation4 + $0x65] ss:$8 sm:$0x3] %vm5469_vm1, %v3512_v40 }
 0x886   :  { %3533 = vst.msk [vmem:[#allocation4 + $0x35] ss:$8 sm:$0x3] %vm5469_vm1, %v3513_v3  ;;  %3545 = vst.msk [vmem:[#allocation4 + $0x75] ss:$8 sm:$0x3] %vm5469_vm1, %v3514_v59 }
 0x887   :  { %4383 = shalt.err (!%p4380_p4)
}
 0x888   :  { %s4384_s20 = scalar_lea.hbm %s5705_s9, 128 }
 0x889   :  { %p4385_p5 = scmp.ne.s32.totalorder %s5705_s9, %s4384_s20  ;;  %p4388_p6 = scmp.lt.u32.totalorder %s4384_s20, %s5705_s9 }
 0x88b   :  { %p4390_p7 = pnand %p4388_p6, %p4385_p5 }
 0x88d   :  { %4393 = shalt.err (!%p4390_p7)
}
 0x88e   :  { %3736 = dma.vmem_to_hbm [thread:$0]  %s3734_s16, 128, %s5705_s9, [#allocation7]  }
 0x88f   :  { %s4445_s26 = smov [#allocation8]  }
 0x890   :  { %s3743_s1 = sshll.u32 %s4445_s26, 4  ;;  %s3744_s1 = int_to_ptr.vmem [resolvable:$true] %s3743_s1 }
 0x891   :  { %s4394_s3 = scalar_lea.vmem %s3744_s1, 128  ;;  %p4399_p9 = scmp.lt.s32.totalorder %s3744_s1, %s3744_s1 }
 0x892   :  { %p4395_p8 = scmp.ne.s32.totalorder %s3744_s1, %s4394_s3  ;;  %p4400_p10 = scmp.lt.s32.totalorder %s4394_s3, %s4394_s3 }
 0x894   :  { %p4401_p11 = por %p4400_p10, %p4399_p9 }
 0x896   :  { %p4402_p12 = pnand %p4401_p11, %p4395_p8 }
 0x898   :  { %4405 = shalt.err (!%p4402_p12)
}
 0x899   :  { %s4406_s29 = scalar_lea.hbm %s5706_s10, 128 }
 0x89a   :  { %p4407_p13 = scmp.ne.s32.totalorder %s5706_s10, %s4406_s29  ;;  %p4410_p0 = scmp.lt.u32.totalorder %s4406_s29, %s5706_s10 }
 0x89c   :  { %p4412_p1 = pnand %p4410_p0, %p4407_p13 }
 0x89e   :  { %4415 = shalt.err (!%p4412_p1)
}
 0x89f   :  { %3746 = dma.vmem_to_hbm [thread:$0]  %s3744_s1, 128, %s5706_s10, [#allocation7]  }
 0x8a0   :  { %s4446_s10 = smov [#allocation4]  }
 0x8a1   :  { %s3720_s5 = sshll.u32 %s4446_s10, 4  ;;  %s3721_s5 = int_to_ptr.vmem [resolvable:$true] %s3720_s5 }
 0x8a2   :  { %s4416_s14 = scalar_lea.vmem %s3721_s5, 2048  ;;  %p4421_p3 = scmp.lt.s32.totalorder %s3721_s5, %s3721_s5 }
 0x8a3   :  { %p4417_p2 = scmp.ne.s32.totalorder %s3721_s5, %s4416_s14  ;;  %p4422_p4 = scmp.lt.s32.totalorder %s4416_s14, %s4416_s14 }
 0x8a5   :  { %p4423_p5 = por %p4422_p4, %p4421_p3 }
 0x8a7   :  { %p4424_p6 = pnand %p4423_p5, %p4417_p2 }
 0x947   :  { %v3031_v36 = vpop.f32.mrb[56].mxu0 }
 0x948   :  { %v3032_v12 = vadd.f32 %v3031_v36, %v5452_v56  ;;  %v3033_v32 = vpop.f32.mrb[57].mxu0 }
 0x949   :  { %v3034_v15 = vadd.f32 %v3033_v32, %v5456_v16  ;;  %v3035_v61 = vpop.f32.mrb[58].mxu0 }
 0x94a   :  { %v3036_v33 = vadd.f32 %v3035_v61, %v5452_v56  ;;  %v3037_v35 = vpop.f32.mrb[59].mxu0 }
 0x94b   :  { %v3549_v57 = vcombine.low %v3032_v12, %v3034_v15  ;;  %v3550_v6 = vcombine.high %v3032_v12, %v3034_v15  ;;  %v3038_v38 = vadd.f32 %v3037_v35, %v5456_v16 }
 0x94d   :  { %v3557_v62 = vrot.slane %v3549_v57, %v5461_v11  ;;  %v3564_v63 = vrot.slane %v3550_v6, %v5461_v11  ;;  %v3633_v7 = vcombine.low %v3036_v33, %v3038_v38  ;;  %v3634_v58 = vcombine.high %v3036_v33, %v3038_v38 }
 0x94f   :  { %v3565_v9 = vcombine.high %v3557_v62, %v3557_v62  ;;  %v3566_v34 = vcombine.high %v3564_v63, %v3564_v63  ;;  %v3573_v31 = vrot.slane %v3557_v62, %v5461_v11  ;;  %v3580_v2 = vrot.slane %v3564_v63, %v5461_v11 }
 0x950   :  { %v3641_v13 = vrot.slane %v3633_v7, %v5461_v11  ;;  %v3648_v56 = vrot.slane %v3634_v58, %v5461_v11 }
 0x951   :  { %v3587_v14 = vrot.slane %v3565_v9, %v5461_v11  ;;  %v3594_v16 = vrot.slane %v3566_v34, %v5461_v11  ;;  %v3595_v17 = vcombine.high %v3573_v31, %v3573_v31  ;;  %v3596_v19 = vcombine.high %v3580_v2, %v3580_v2  ;;  %3608 = vst.msk [vmem:[#allocation4 + $0x6] ss:$8 sm:$0x3] %vm5469_vm1, %v3573_v31 }
 0x952   :  { %3620 = vst.msk [vmem:[#allocation4 + $0x46] ss:$8 sm:$0x3] %vm5469_vm1, %v3580_v2  ;;  %v3649_v24 = vcombine.high %v3641_v13, %v3641_v13  ;;  %v3650_v26 = vcombine.high %v3648_v56, %v3648_v56  ;;  %v3657_v27 = vrot.slane %v3641_v13, %v5461_v11  ;;  %v3664_v29 = vrot.slane %v3648_v56, %v5461_v11 }
 0x953   :  { %v3597_v25 = vcombine.high %v3587_v14, %v3587_v14  ;;  %v3598_v37 = vcombine.high %v3594_v16, %v3594_v16  ;;  %3611 = vst.msk [vmem:[#allocation4 + $0x16] ss:$8 sm:$0x3] %vm5469_vm1, %v3587_v14  ;;  %3614 = vst.msk [vmem:[#allocation4 + $0x26] ss:$8 sm:$0x3] %vm5469_vm1, %v3595_v17 }
 0x954   :  { %3623 = vst.msk [vmem:[#allocation4 + $0x56] ss:$8 sm:$0x3] %vm5469_vm1, %v3594_v16  ;;  %3626 = vst.msk [vmem:[#allocation4 + $0x66] ss:$8 sm:$0x3] %vm5469_vm1, %v3596_v19  ;;  %v3671_v30 = vrot.slane %v3649_v24, %v5461_v11  ;;  %v3678_v41 = vrot.slane %v3650_v26, %v5461_v11  ;;  %v3679_v18 = vcombine.high %v3657_v27, %v3657_v27 }
 0x955   :  { %v3680_v0 = vcombine.high %v3664_v29, %v3664_v29  ;;  %3692 = vst.msk [vmem:[#allocation4 + $0x7] ss:$8 sm:$0x3] %vm5469_vm1, %v3657_v27  ;;  %3704 = vst.msk [vmem:[#allocation4 + $0x47] ss:$8 sm:$0x3] %vm5469_vm1, %v3664_v29 }
 0x956   :  { %3617 = vst.msk [vmem:[#allocation4 + $0x36] ss:$8 sm:$0x3] %vm5469_vm1, %v3597_v25  ;;  %3629 = vst.msk [vmem:[#allocation4 + $0x76] ss:$8 sm:$0x3] %vm5469_vm1, %v3598_v37  ;;  %v3681_v42 = vcombine.high %v3671_v30, %v3671_v30  ;;  %v3682_v43 = vcombine.high %v3678_v41, %v3678_v41 }
 0x957   :  { %3695 = vst.msk [vmem:[#allocation4 + $0x17] ss:$8 sm:$0x3] %vm5469_vm1, %v3671_v30  ;;  %3698 = vst.msk [vmem:[#allocation4 + $0x27] ss:$8 sm:$0x3] %vm5469_vm1, %v3679_v18 }
 0x958   :  { %3707 = vst.msk [vmem:[#allocation4 + $0x57] ss:$8 sm:$0x3] %vm5469_vm1, %v3678_v41  ;;  %3710 = vst.msk [vmem:[#allocation4 + $0x67] ss:$8 sm:$0x3] %vm5469_vm1, %v3680_v0 }
 0x959   :  { %3701 = vst.msk [vmem:[#allocation4 + $0x37] ss:$8 sm:$0x3] %vm5469_vm1, %v3681_v42  ;;  %3713 = vst.msk [vmem:[#allocation4 + $0x77] ss:$8 sm:$0x3] %vm5469_vm1, %v3682_v43 }
 0x95a   :  { %4427 = shalt.err (!%p4424_p6)
}
 0x95b   :  { %s4428_s15 = scalar_lea.hbm %s5704_s8, 2048 }
 0x95c   :  { %p4429_p7 = scmp.ne.s32.totalorder %s5704_s8, %s4428_s15  ;;  %p4432_p8 = scmp.lt.u32.totalorder %s4428_s15, %s5704_s8 }
 0x95e   :  { %p4434_p9 = pnand %p4432_p8, %p4429_p7 }
 0x960   :  { %4437 = shalt.err (!%p4434_p9)
}
 0x961   :  { %s4447_s19 = smov 256   ;;  %s4448_s20 = smov 16  }
 0x962   :  { %3726 = dma.vmem_to_hbm [thread:$0]  %s3721_s5, 2048, %s5704_s8, [#allocation5], %s4447_s19, %s4447_s19, %s4448_s20  }
 0x963   :  { %4438 = dma.done.wait [#allocation5], 2048  }
 0x964   :  { %4439 = vsyncadd [#allocation5], 4294965248 }
 0x965   :  { %4440 = dma.done.wait [#allocation7], 256  }
 0x966   :  { %4441 = vsyncadd [#allocation7], 4294967040 }
 0x967   :  { %3756 = vsyncpa [#allocation5], 1 }
 0x968   :  { %3757 = vsyncpa [#allocation7], 1 }

</bundles_post_ra>
